<compile_context>
chip_gen: v5e
topology: v5e:2x2
jax: 0.10.0
libtpu: 0.0.40
codegen_flags: <defaults>
</compile_context>

<pallas_src>
import jax
import jax.numpy as jnp
import numpy as np
from jax.experimental import pallas as pl
from jax.experimental.pallas import tpu as pltpu

# ----------------------- model dimensions -----------------------
FEAT_DIM = 512                      # CLIP embedding dim (Adapter(512, 4))
REDUCTION = 4
HIDDEN_DIM = FEAT_DIM // REDUCTION  # 128
RATIO = 0.2                         # adapter residual ratio from forward()


def _round_up(x, m):
    return ((x + m - 1) // m) * m


def _choose_tk(P, target):
    """Reduction-chunk size along the flattened-pixel axis.

    Multiple of 128, large enough to amortize per-grid-step overhead, and
    preferably a divisor of P so no pixel padding is needed.
    """
    target = max(128, _round_up(int(target), 128))
    if P <= target:
        return _round_up(P, 128)          # single reduction chunk
    for cand in range(target, 1024 - 1, -128):   # largest divisor of P <= target
        if P % cand == 0:
            return cand
    return target                          # fall back to zero-padded tail


def _choose_tm(B):
    """Batch-tile size.

    >= 16 rows (a bf16 vreg holds (16,128)); >= 2 tiles on the 'parallel'
    grid axis when 32 <= B < 256 so both v7x TensorCores get work; 256 for
    large B to halve the number of full w_img re-streams from HBM.
    """
    if B >= 256:
        return 256
    if B >= 32:
        return min(128, _round_up(pl.cdiv(B, 2), 16))
    return _round_up(max(B, 1), 16)


def _vmem_budget_bytes():
    """Physical-VMEM-aware cap (64 MiB on v7x vs 128 MiB on v5e/v6e)."""
    cap = 64 * 1024 * 1024
    try:
        cap = int(pltpu.get_tpu_info().vmem_capacity_bytes)
    except Exception:
        pass
    # Leave headroom for compiler-internal scratch.
    return min(int(cap * 3 // 4), 96 * 1024 * 1024)


def _resident_spec(shape):
    """BlockSpec for an invariant (never-revisited) VMEM-resident operand.

    Requests a single pipeline buffer when the running JAX supports
    pipeline_mode=pl.Buffered; falls back to the default otherwise.
    """
    idx = lambda i, k: (0, 0)
    buffered = getattr(pl, "Buffered", None)
    if buffered is not None:
        try:
            return pl.BlockSpec(shape, idx, pipeline_mode=buffered(buffer_count=1))
        except TypeError:
            pass
    return pl.BlockSpec(shape, idx)


# ----------------------------- kernel -----------------------------
def custom_clip_kernel(img_ref, w_img_ref, w1_ref, w2_ref, txt_t_ref,
                       out_ref, acc_ref):
    """Fused CustomCLIP forward, grid = (batch tiles, pixel-chunk reduction).

    img_ref   : (TM, TK)    bf16  flattened image pixel tile
    w_img_ref : (TK, D)     bf16  visual-encoder projection tile
    w1_ref    : (D, D/4)    bf16  adapter fc1 (VMEM resident)
    w2_ref    : (D/4, D)    bf16  adapter fc2 (VMEM resident)
    txt_t_ref : (D, C_pad)  bf16  pre-normalized, pre-scaled, pre-transposed
                                  text features (VMEM resident)
    out_ref   : (TM, C_pad) f32   logits tile (resident over the k axis)
    acc_ref   : (TM, D)     f32   image-feature accumulator scratch
    """
    k = pl.program_id(1)

    @pl.when(k == 0)
    def _init():
        acc_ref[...] = jnp.zeros_like(acc_ref)

    # --- image encoder projection chunk (bf16 MXU, f32 accumulate) ---
    acc_ref[...] += jnp.dot(img_ref[...], w_img_ref[...],
                            preferred_element_type=jnp.float32)

    @pl.when(k == pl.num_programs(1) - 1)
    def _epilogue():
        feat = acc_ref[...]                                      # (TM, D) f32

        # --- Adapter: Linear -> ReLU -> Linear -> ReLU ---
        h = jnp.maximum(
            jnp.dot(feat.astype(jnp.bfloat16), w1_ref[...],
                    preferred_element_type=jnp.float32), 0.0)
        x = jnp.maximum(
            jnp.dot(h.astype(jnp.bfloat16), w2_ref[...],
                    preferred_element_type=jnp.float32), 0.0)

        # --- residual blend, written back in place (fewer live f32 temps) ---
        acc_ref[...] = RATIO * x + (1.0 - RATIO) * feat
        blended = acc_ref[...]

        # --- L2 normalize image features (rsqrt -> EUP slot) ---
        # tiny clamp keeps zero-padded batch rows finite; no-op for real rows.
        ss = jnp.sum(blended * blended, axis=-1, keepdims=True)
        img_n = blended * jax.lax.rsqrt(jnp.maximum(ss, 1e-30))

        # --- logits: text already normalized, exp(logit_scale)-scaled and
        #     transposed to (D, C_pad) at prepare time ---
        out_ref[...] = jnp.dot(img_n.astype(jnp.bfloat16), txt_t_ref[...],
                               preferred_element_type=jnp.float32
                               ).astype(out_ref.dtype)


# ----------------------- one-time weight prep -----------------------
def prepare_custom_clip_params(w_img, w1, w2, text_features, logit_scale,
                               *, tk_target=4096):
    """One-time frozen-weight preparation (hoisted out of the hot path).

    Folds the frozen text path (L2 normalize, exp(logit_scale) scale,
    transpose, lane pad) and casts/pads the dominant w_img operand once, so
    per-forward HBM traffic is only the image plus a single read of the
    prepared weights by the kernel.
    """
    bf16 = jnp.bfloat16
    P, D = w_img.shape
    Hd = w1.shape[1]
    C = text_features.shape[0]

    TK = _choose_tk(P, tk_target)
    P_pad = _round_up(P, TK)
    C_pad = _round_up(C, 128)                     # lane-dense output stores

    txt_n = text_features / jnp.linalg.norm(text_features, axis=-1,
                                            keepdims=True)
    txt_scaled = (jnp.exp(logit_scale[0]) * txt_n).astype(bf16)       # (C, D)
    txt_t = jnp.zeros((D, C_pad), bf16).at[:, :C].set(txt_scaled.T)   # (D,C_pad)

    w_img_p = jnp.zeros((P_pad, D), bf16).at[:P, :].set(w_img.astype(bf16))

    return {
        "w_img": w_img_p, "w1": w1.astype(bf16), "w2": w2.astype(bf16),
        "txt_t": txt_t,
        "P": P, "P_pad": P_pad, "D": D, "Hd": Hd,
        "C": C, "C_pad": C_pad, "TK": TK,
    }


# ----------------------------- forward -----------------------------
def custom_clip_forward(image_nchw, params):
    """Per-call hot path: pad/cast the image, run the fused kernel."""
    bf16 = jnp.bfloat16
    B = image_nchw.shape[0]
    img_flat = image_nchw.reshape(B, -1)

    P, P_pad = params["P"], params["P_pad"]
    D, Hd = params["D"], params["Hd"]
    C, C_pad, TK = params["C"], params["C_pad"], params["TK"]
    assert img_flat.shape[1] == P, "image pixel count mismatch with prepared weights"

    TM = _choose_tm(B)
    B_pad = _round_up(B, TM)

    img_p = jnp.zeros((B_pad, P_pad), bf16).at[:B, :P].set(img_flat.astype(bf16))

    grid = (B_pad // TM, P_pad // TK)

    # VMEM working set: double-buffered streaming tiles + residents + scratch.
    need = (2 * TM * TK * 2                       # image tiles (bf16, x2 bufs)
            + 2 * TK * D * 2                      # w_img tiles (bf16, x2 bufs)
            + (D * Hd + Hd * D + D * C_pad) * 2   # resident bf16 weights
            + 2 * TM * C_pad * 4                  # output tile (f32)
            + TM * D * 4)                         # f32 accumulator scratch
    vmem_limit = int(min(_vmem_budget_bytes(),
                         max(32 * 1024 * 1024, need + (4 << 20))))

    out = pl.pallas_call(
        custom_clip_kernel,
        out_shape=jax.ShapeDtypeStruct((B_pad, C_pad), jnp.float32),
        grid_spec=pltpu.PrefetchScalarGridSpec(
            num_scalar_prefetch=0,
            grid=grid,
            in_specs=[
                pl.BlockSpec((TM, TK), lambda i, k: (i, k)),     # image tile
                pl.BlockSpec((TK, D), lambda i, k: (k, 0)),      # w_img tile
                _resident_spec((D, Hd)),                         # w1 resident
                _resident_spec((Hd, D)),                         # w2 resident
                _resident_spec((D, C_pad)),                      # txt resident
            ],
            out_specs=pl.BlockSpec((TM, C_pad), lambda i, k: (i, 0)),
            scratch_shapes=[pltpu.VMEM((TM, D), jnp.float32)],
        ),
        compiler_params=pltpu.CompilerParams(
            dimension_semantics=("parallel", "arbitrary"),
            vmem_limit_bytes=vmem_limit,
        ),
    )(img_p, params["w_img"], params["w1"], params["w2"], params["txt_t"])

    return out[:B, :C]


# ----------------------------- reference -----------------------------
def reference_forward(image_nchw, w_img, w1, w2, text_features, logit_scale):
    """Pure-JAX reference mirroring the PyTorch forward with the same
    mixed precision (bf16 operands, f32 accumulation) as the kernel."""
    bf = jnp.bfloat16
    B = image_nchw.shape[0]
    img = image_nchw.reshape(B, -1)
    feat = jnp.dot(img.astype(bf), w_img.astype(bf),
                   preferred_element_type=jnp.float32)
    h = jnp.maximum(jnp.dot(feat.astype(bf), w1.astype(bf),
                            preferred_element_type=jnp.float32), 0.0)
    x = jnp.maximum(jnp.dot(h.astype(bf), w2.astype(bf),
                            preferred_element_type=jnp.float32), 0.0)
    blended = RATIO * x + (1.0 - RATIO) * feat
    img_n = blended / jnp.linalg.norm(blended, axis=-1, keepdims=True)
    txt_n = text_features / jnp.linalg.norm(text_features, axis=-1,
                                            keepdims=True)
    txt_scaled = (jnp.exp(logit_scale[0]) * txt_n).astype(bf)
    return jnp.dot(img_n.astype(bf), txt_scaled.T,
                   preferred_element_type=jnp.float32)


if __name__ == "__main__":
    key = jax.random.PRNGKey(0)
    k_img, k_wimg, k_w1, k_w2, k_txt = jax.random.split(key, 5)

    # Small synthetic shapes consistent with the module's forward.
    B, Cch, H, W = 2, 3, 16, 16          # NCHW image batch
    P = Cch * H * W                      # 768 flattened pixels
    NUM_CLASSES = 16

    image = jax.random.normal(k_img, (B, Cch, H, W), dtype=jnp.float32)

    # Deterministic synthetic parameters.
    w_img = jax.random.normal(k_wimg, (P, FEAT_DIM), dtype=jnp.float32) * 0.02
    w1 = jax.random.normal(k_w1, (FEAT_DIM, HIDDEN_DIM), dtype=jnp.float32) * 0.05
    w2 = jax.random.normal(k_w2, (HIDDEN_DIM, FEAT_DIM), dtype=jnp.float32) * 0.05
    text_features = jax.random.normal(k_txt, (NUM_CLASSES, FEAT_DIM),
                                      dtype=jnp.float32)
    # CLIP's logit_scale init: ln(1/0.07)
    logit_scale = jnp.array([np.log(1.0 / 0.07)], dtype=jnp.float32)

    # One-time weight preparation (NOT part of the per-call hot path).
    params = prepare_custom_clip_params(w_img, w1, w2, text_features,
                                        logit_scale)

    logits = custom_clip_forward(image, params)
    logits = jax.block_until_ready(logits)

    ref = reference_forward(image, w_img, w1, w2, text_features, logit_scale)
    np.testing.assert_allclose(np.asarray(logits),
                               np.asarray(ref, dtype=np.float32),
                               rtol=5e-3, atol=5e-3)

    assert logits.shape == (B, NUM_CLASSES)
    print("KERNEL_OK")
</pallas_src>

<mosaic_0001>
module attributes {stable_mosaic.version = 11 : i64} {
  func.func @custom_clip_kernel(%arg0: i32, %arg1: i32, %arg2: memref<16x768xbf16, #tpu.memory_space<vmem>>, %arg3: memref<768x512xbf16, #tpu.memory_space<vmem>>, %arg4: memref<512x128xbf16, #tpu.memory_space<vmem>>, %arg5: memref<128x512xbf16, #tpu.memory_space<vmem>>, %arg6: memref<512x128xbf16, #tpu.memory_space<vmem>>, %arg7: memref<16x128xf32, #tpu.memory_space<vmem>>, %arg8: memref<16x512xf32, #tpu.memory_space<vmem>>) attributes {dimension_semantics = [#tpu.dimension_semantics<parallel>, #tpu.dimension_semantics<arbitrary>], iteration_bounds = array<i64: 1, 1>, scalar_prefetch = 0 : i64, scratch_operands = 1 : i64, tpu.core_type = #tpu.core_type<tc>, window_params = [{transform_indices = @transform_0, window_bounds = array<i64: 16, 768>}, {transform_indices = @transform_1, window_bounds = array<i64: 768, 512>}, {pipeline_mode = #tpu.pipeline_mode<synchronous>, transform_indices = @transform_2, window_bounds = array<i64: 512, 128>}, {pipeline_mode = #tpu.pipeline_mode<synchronous>, transform_indices = @transform_3, window_bounds = array<i64: 128, 512>}, {pipeline_mode = #tpu.pipeline_mode<synchronous>, transform_indices = @transform_4, window_bounds = array<i64: 512, 128>}, {transform_indices = @transform_5, window_bounds = array<i64: 16, 128>}]} {
    %c0_i32 = arith.constant 0 : i32
    %0 = arith.cmpi eq, %arg1, %c0_i32 : i32
    %1 = arith.extui %0 : i1 to i32
    %c0_i32_0 = arith.constant 0 : i32
    %2 = arith.cmpi ne, %1, %c0_i32_0 : i32
    scf.if %2 {
      %cst_10 = arith.constant 0.000000e+00 : f32
      %12 = vector.broadcast %cst_10 : f32 to vector<16x512xf32>
      %c0_11 = arith.constant 0 : index
      %c0_12 = arith.constant 0 : index
      %13 = vector.load %arg8[%c0_11, %c0_12] : memref<16x512xf32, #tpu.memory_space<vmem>>, vector<16x512xf32>
      tpu.vector_store %arg8[%c0_11, %c0_12], %12 {strides = array<i32>} : memref<16x512xf32, #tpu.memory_space<vmem>>, vector<16x512xf32>,
    } else {
    }
    %c0 = arith.constant 0 : index
    %c0_1 = arith.constant 0 : index
    %3 = vector.load %arg8[%c0, %c0_1] : memref<16x512xf32, #tpu.memory_space<vmem>>, vector<16x512xf32>
    %c0_2 = arith.constant 0 : index
    %c0_3 = arith.constant 0 : index
    %4 = vector.load %arg2[%c0_2, %c0_3] : memref<16x768xbf16, #tpu.memory_space<vmem>>, vector<16x768xbf16>
    %c0_4 = arith.constant 0 : index
    %c0_5 = arith.constant 0 : index
    %5 = vector.load %arg3[%c0_4, %c0_5] : memref<768x512xbf16, #tpu.memory_space<vmem>>, vector<768x512xbf16>
    %cst = arith.constant dense<0.000000e+00> : vector<16x512xf32>
    %6 = tpu.matmul %4, %5, %cst {dimension_numbers = #tpu.dot_dimension_numbers<[1], [0], [0], [1], [0, 0, 1, 1], [], []>} : vector<16x768xbf16>, vector<768x512xbf16>, vector<16x512xf32> -> vector<16x512xf32>
    %7 = arith.addf %3, %6 : vector<16x512xf32>
    %c0_6 = arith.constant 0 : index
    %c0_7 = arith.constant 0 : index
    %8 = vector.load %arg8[%c0_6, %c0_7] : memref<16x512xf32, #tpu.memory_space<vmem>>, vector<16x512xf32>
    tpu.vector_store %arg8[%c0_6, %c0_7], %7 {strides = array<i32>} : memref<16x512xf32, #tpu.memory_space<vmem>>, vector<16x512xf32>,
    %c0_i32_8 = arith.constant 0 : i32
    %9 = arith.cmpi eq, %arg1, %c0_i32_8 : i32
    %10 = arith.extui %9 : i1 to i32
    %c0_i32_9 = arith.constant 0 : i32
    %11 = arith.cmpi ne, %10, %c0_i32_9 : i32
    scf.if %11 {
      %c0_10 = arith.constant 0 : index
      %c0_11 = arith.constant 0 : index
      %12 = vector.load %arg8[%c0_10, %c0_11] : memref<16x512xf32, #tpu.memory_space<vmem>>, vector<16x512xf32>
      %13 = arith.truncf %12 : vector<16x512xf32> to vector<16x512xbf16>
      %c0_12 = arith.constant 0 : index
      %c0_13 = arith.constant 0 : index
      %14 = vector.load %arg4[%c0_12, %c0_13] : memref<512x128xbf16, #tpu.memory_space<vmem>>, vector<512x128xbf16>
      %cst_14 = arith.constant dense<0.000000e+00> : vector<16x128xf32>
      %15 = tpu.matmul %13, %14, %cst_14 {dimension_numbers = #tpu.dot_dimension_numbers<[1], [0], [0], [1], [0, 0, 1, 1], [], []>} : vector<16x512xbf16>, vector<512x128xbf16>, vector<16x128xf32> -> vector<16x128xf32>
      %cst_15 = arith.constant 0.000000e+00 : f32
      %16 = vector.broadcast %cst_15 : f32 to vector<16x128xf32>
      %17 = arith.maximumf %15, %16 : vector<16x128xf32>
      %18 = arith.truncf %17 : vector<16x128xf32> to vector<16x128xbf16>
      %c0_16 = arith.constant 0 : index
      %c0_17 = arith.constant 0 : index
      %19 = vector.load %arg5[%c0_16, %c0_17] : memref<128x512xbf16, #tpu.memory_space<vmem>>, vector<128x512xbf16>
      %cst_18 = arith.constant dense<0.000000e+00> : vector<16x512xf32>
      %20 = tpu.matmul %18, %19, %cst_18 {dimension_numbers = #tpu.dot_dimension_numbers<[1], [0], [0], [1], [0, 0, 1, 1], [], []>} : vector<16x128xbf16>, vector<128x512xbf16>, vector<16x512xf32> -> vector<16x512xf32>
      %cst_19 = arith.constant 0.000000e+00 : f32
      %21 = vector.broadcast %cst_19 : f32 to vector<16x512xf32>
      %22 = arith.maximumf %20, %21 : vector<16x512xf32>
      %cst_20 = arith.constant 2.000000e-01 : f32
      %23 = vector.broadcast %cst_20 : f32 to vector<16x512xf32>
      %24 = arith.mulf %23, %22 : vector<16x512xf32>
      %cst_21 = arith.constant 8.000000e-01 : f32
      %25 = vector.broadcast %cst_21 : f32 to vector<16x512xf32>
      %26 = arith.mulf %25, %12 : vector<16x512xf32>
      %27 = arith.addf %24, %26 : vector<16x512xf32>
      %c0_22 = arith.constant 0 : index
      %c0_23 = arith.constant 0 : index
      %28 = vector.load %arg8[%c0_22, %c0_23] : memref<16x512xf32, #tpu.memory_space<vmem>>, vector<16x512xf32>
      tpu.vector_store %arg8[%c0_22, %c0_23], %27 {strides = array<i32>} : memref<16x512xf32, #tpu.memory_space<vmem>>, vector<16x512xf32>,
      %c0_24 = arith.constant 0 : index
      %c0_25 = arith.constant 0 : index
      %29 = vector.load %arg8[%c0_24, %c0_25] : memref<16x512xf32, #tpu.memory_space<vmem>>, vector<16x512xf32>
      %30 = arith.mulf %29, %29 : vector<16x512xf32>
      %cst_26 = arith.constant dense<0.000000e+00> : vector<16xf32>
      %31 = vector.multi_reduction <add>, %30, %cst_26 [1] : vector<16x512xf32> to vector<16xf32>
      %32 = vector.shape_cast %31 : vector<16xf32> to vector<16x1xf32>
      %cst_27 = arith.constant 1.000000e-30 : f32
      %33 = vector.broadcast %cst_27 : f32 to vector<16x1xf32>
      %34 = arith.maximumf %32, %33 : vector<16x1xf32>
      %35 = math.rsqrt %34 : vector<16x1xf32>
      %36 = vector.broadcast %35 : vector<16x1xf32> to vector<16x512xf32>
      %37 = arith.mulf %29, %36 : vector<16x512xf32>
      %38 = arith.truncf %37 : vector<16x512xf32> to vector<16x512xbf16>
      %c0_28 = arith.constant 0 : index
      %c0_29 = arith.constant 0 : index
      %39 = vector.load %arg6[%c0_28, %c0_29] : memref<512x128xbf16, #tpu.memory_space<vmem>>, vector<512x128xbf16>
      %cst_30 = arith.constant dense<0.000000e+00> : vector<16x128xf32>
      %40 = tpu.matmul %38, %39, %cst_30 {dimension_numbers = #tpu.dot_dimension_numbers<[1], [0], [0], [1], [0, 0, 1, 1], [], []>} : vector<16x512xbf16>, vector<512x128xbf16>, vector<16x128xf32> -> vector<16x128xf32>
      %c0_31 = arith.constant 0 : index
      %c0_32 = arith.constant 0 : index
      %41 = vector.load %arg7[%c0_31, %c0_32] : memref<16x128xf32, #tpu.memory_space<vmem>>, vector<16x128xf32>
      tpu.vector_store %arg7[%c0_31, %c0_32], %40 {strides = array<i32>} : memref<16x128xf32, #tpu.memory_space<vmem>>, vector<16x128xf32>,
    } else {
    }
    return
  }
  func.func @transform_0(%arg0: i32, %arg1: i32) -> (i32, i32) {
    %c0_i32 = arith.constant 0 : i32
    return %arg0, %arg1 : i32, i32
  }
  func.func @transform_1(%arg0: i32, %arg1: i32) -> (i32, i32) {
    %c0_i32 = arith.constant 0 : i32
    %c0_i32_0 = arith.constant 0 : i32
    return %arg1, %c0_i32 : i32, i32
  }
  func.func @transform_2(%arg0: i32, %arg1: i32) -> (i32, i32) {
    %c0_i32 = arith.constant 0 : i32
    %c0_i32_0 = arith.constant 0 : i32
    %c0_i32_1 = arith.constant 0 : i32
    return %c0_i32, %c0_i32_0 : i32, i32
  }
  func.func @transform_3(%arg0: i32, %arg1: i32) -> (i32, i32) {
    %c0_i32 = arith.constant 0 : i32
    %c0_i32_0 = arith.constant 0 : i32
    %c0_i32_1 = arith.constant 0 : i32
    return %c0_i32, %c0_i32_0 : i32, i32
  }
  func.func @transform_4(%arg0: i32, %arg1: i32) -> (i32, i32) {
    %c0_i32 = arith.constant 0 : i32
    %c0_i32_0 = arith.constant 0 : i32
    %c0_i32_1 = arith.constant 0 : i32
    return %c0_i32, %c0_i32_0 : i32, i32
  }
  func.func @transform_5(%arg0: i32, %arg1: i32) -> (i32, i32) {
    %c0_i32 = arith.constant 0 : i32
    %c0_i32_0 = arith.constant 0 : i32
    return %arg0, %c0_i32 : i32, i32
  }
}

</mosaic_0001>

<bundles_post_ra>
// kernel: tpu_custom_call.1
= control target key start
LH: loop header
LB: loop body
LE: loop exit
PB: predicated region body
PF: predicated region fallthrough
CT: control target
= control target key end

     0   :  { %10 = vsyncpa [#allocation4], 0  ;;  %s4482_s0 = inlined_call_operand.hbm [shape: bf16[16,768], index: 0, kind: input, shape index: {}]   ;;  %s4483_s1 = inlined_call_operand.hbm [shape: bf16[768,512], index: 1, kind: input, shape index: {}]   ;;  %s4484_s2 = inlined_call_operand.hbm [shape: bf16[512,128], index: 2, kind: input, shape index: {}]   ;;  %s4485_s3 = inlined_call_operand.hbm [shape: bf16[128,512], index: 3, kind: input, shape index: {}]   ;;  %s4486_s4 = inlined_call_operand.hbm [shape: bf16[512,128], index: 4, kind: input, shape index: {}]   ;;  %s4487_s5 = inlined_call_operand.hbm [shape: f32[16,128], index: 5, kind: output, shape index: {}]  }
   0x1   :  { %11 = vsyncpa [#allocation7], 0 }
   0x2   :  { %12 = vsyncpa [#allocation10], 0  ;;  %s31_s20 = sshll.u32 %s4483_s1, 4  ;;  %s32_s20 = int_to_ptr.hbm [resolvable:$true] %s31_s20 }
   0x3   :  { %13 = vsyncpa [#allocation5], 0  ;;  %s4312_s21 = smov [#allocation6]   ;;  %s57_s25 = sshll.u32 %s4485_s3, 4  ;;  %s58_s25 = int_to_ptr.hbm [resolvable:$true] %s57_s25 }
   0x4   :  { %s33_s22 = sshll.u32 %s4312_s21, 4  ;;  %s4313_s26 = smov 256   ;;  %s34_s22 = int_to_ptr.vmem [resolvable:$true] %s33_s22 }
   0x5   :  { %s4314_s27 = smov 16   ;;  %s4315_s28 = smov [#allocation9]  }
   0x6   :  { %39 = dma.hbm_to_vmem [thread:$0]  %s32_s20, 24576, %s34_s22, [#allocation7], %s4313_s26, %s4313_s26, %s4314_s27  }
   0x7   :  { %s59_s29 = sshll.u32 %s4315_s28, 4  ;;  %s18_s7 = sshll.u32 %s4482_s0, 4  ;;  %s60_s29 = int_to_ptr.vmem [resolvable:$true] %s59_s29  ;;  %s19_s7 = int_to_ptr.hbm [resolvable:$true] %s18_s7 }
   0x8   :  { %65 = dma.hbm_to_vmem [thread:$0]  %s58_s25, 4096, %s60_s29, [#allocation10], %s4313_s26, %s4313_s26, %s4314_s27  }
   0x9   :  { %s4316_s1 = smov [#allocation3]   ;;  %s44_s3 = sshll.u32 %s4484_s2, 4  ;;  %s45_s3 = int_to_ptr.hbm [resolvable:$true] %s44_s3 }
   0xa   :  { %s20_s8 = sshll.u32 %s4316_s1, 4  ;;  %s4317_s11 = smov 384   ;;  %s21_s8 = int_to_ptr.vmem [resolvable:$true] %s20_s8 }
   0xb   :  { %s4318_s12 = smov 24   ;;  %s4319_s13 = smov [#allocation8]  }
   0xc   :  { %26 = dma.hbm_to_vmem [thread:$0]  %s19_s7, 768, %s21_s8, [#allocation4], %s4317_s11, %s4317_s11, %s4318_s12  }
   0xd   :  { %s46_s14 = sshll.u32 %s4319_s13, 4  ;;  %s4320_s15 = smov 64   ;;  %s47_s14 = int_to_ptr.vmem [resolvable:$true] %s46_s14 }
   0xe   :  { %s4321_s16 = smov 4   ;;  %s70_s18 = sshll.u32 %s4486_s4, 4  ;;  %s71_s18 = int_to_ptr.hbm [resolvable:$true] %s70_s18 }
   0xf   :  { %52 = dma.hbm_to_vmem [thread:$0]  %s45_s3, 4096, %s47_s14, [#allocation7], %s4320_s15, %s4320_s15, %s4321_s16  }
  0x10   :  { %s4322_s19 = smov [#allocation11]  }
  0x11   :  { %s72_s20 = sshll.u32 %s4322_s19, 4  ;;  %s73_s20 = int_to_ptr.vmem [resolvable:$true] %s72_s20 }
  0x12   :  { %78 = dma.hbm_to_vmem [thread:$0]  %s71_s18, 4096, %s73_s20, [#allocation10], %s4320_s15, %s4320_s15, %s4321_s16  }
  0x13   :  { %4304 = dma.done.wait [#allocation4], 768  }
  0x14   :  { %4305 = vsyncadd [#allocation4], 4294966528 }
  0x15   :  { %4306 = dma.done.wait [#allocation7], 28672  }
  0x16   :  { %4307 = vsyncadd [#allocation7], 4294938624 }
  0x17   :  { %4308 = dma.done.wait [#allocation10], 8192  }
  0x18   :  { %4309 = vsyncadd [#allocation10], 4294959104  ;;  %v2810_v0 = vld [vmem:[#allocation6 + $0xe0] sm:$0xf]  ;;  %v3884_v1 = vld [vmem:[#allocation6 + $0xec] sm:$0xf0] }
  0x19   :  { %v2938_v2 = vld [vmem:[#allocation6 + $0x1e0] sm:$0xf]  ;;  %v2811_v3 = vor.u32 %v3884_v1, %v2810_v0  ;;  %v3916_v4 = vld [vmem:[#allocation6 + $0x1ec] sm:$0xf0]  ;;  %s4323_s2 = smov [#allocation12]   ;;  %s2657_s23 = sshll.u32 %s4487_s5, 4  ;;  %s2658_s23 = int_to_ptr.hbm [resolvable:$true] %s2657_s23 }
  0x1a   :  { %v3066_v5 = vld [vmem:[#allocation6 + $0x2e0] sm:$0xf]  ;;  %v3948_v6 = vld [vmem:[#allocation6 + $0x2ec] sm:$0xf0]  ;;  %v2939_v7 = vor.u32 %v3916_v4, %v2938_v2  ;;  %s2655_s4 = sshll.u32 %s4323_s2, 4  ;;  %s4324_s24 = smov 128   ;;  %s2656_s4 = int_to_ptr.vmem [resolvable:$true] %s2655_s4 }
  0x1b   :  { %v3067_v8 = vor.u32 %v3948_v6, %v3066_v5  ;;  %v3194_v9 = vld [vmem:[#allocation6 + $0x3e0] sm:$0xf]  ;;  %v3980_v10 = vld [vmem:[#allocation6 + $0x3ec] sm:$0xf0]  ;;  %1307 = vmatpush.bf16.msra.mxu0 %v2811_v3  ;;  %s4325_s25 = smov 8  }
  0x1c   :  { %v2794_v11 = vld [vmem:[#allocation6 + $0xc0] sm:$0xf]  ;;  %v3195_v12 = vor.u32 %v3980_v10, %v3194_v9  ;;  %v3880_v13 = vld [vmem:[#allocation6 + $0xcc] sm:$0xf0]  ;;  %1321 = vmatpush.bf16.msra.mxu1 %v2939_v7 }
  0x1d   :  { %v2922_v14 = vld [vmem:[#allocation6 + $0x1c0] sm:$0xf]  ;;  %v3912_v15 = vld [vmem:[#allocation6 + $0x1cc] sm:$0xf0]  ;;  %1335 = vmatpush.bf16.msra.mxu2 %v3067_v8  ;;  %v2795_v16 = vor.u32 %v3880_v13, %v2794_v11 }
  0x1e   :  { %v2923_v17 = vor.u32 %v3912_v15, %v2922_v14  ;;  %v3050_v18 = vld [vmem:[#allocation6 + $0x2c0] sm:$0xf]  ;;  %v3944_v19 = vld [vmem:[#allocation6 + $0x2cc] sm:$0xf0]  ;;  %1349 = vmatpush.bf16.msra.mxu3 %v3195_v12 }
  0x1f   :  { %v3178_v20 = vld [vmem:[#allocation6 + $0x3c0] sm:$0xf]  ;;  %v3051_v21 = vor.u32 %v3944_v19, %v3050_v18  ;;  %v3976_v22 = vld [vmem:[#allocation6 + $0x3cc] sm:$0xf0]  ;;  %1308 = vmatpush.bf16.msra.mxu0 %v2795_v16 }
  0x20   :  { %v2778_v23 = vld [vmem:[#allocation6 + $0xa0] sm:$0xf]  ;;  %v3876_v24 = vld [vmem:[#allocation6 + $0xac] sm:$0xf0]  ;;  %v3179_v25 = vor.u32 %v3976_v22, %v3178_v20  ;;  %1322 = vmatpush.bf16.msra.mxu1 %v2923_v17 }
  0x21   :  { %v2906_v26 = vld [vmem:[#allocation6 + $0x1a0] sm:$0xf]  ;;  %v3908_v27 = vld [vmem:[#allocation6 + $0x1ac] sm:$0xf0]  ;;  %v2779_v29 = vor.u32 %v3876_v24, %v2778_v23  ;;  %1336 = vmatpush.bf16.msra.mxu2 %v3051_v21 }
  0x22   :  { %v3034_v28 = vld [vmem:[#allocation6 + $0x2a0] sm:$0xf]  ;;  %v3940_v30 = vld [vmem:[#allocation6 + $0x2ac] sm:$0xf0]  ;;  %v2907_v33 = vor.u32 %v3908_v27, %v2906_v26  ;;  %1350 = vmatpush.bf16.msra.mxu3 %v3179_v25 }
  0x23   :  { %v3162_v31 = vld [vmem:[#allocation6 + $0x3a0] sm:$0xf]  ;;  %v3972_v32 = vld [vmem:[#allocation6 + $0x3ac] sm:$0xf0]  ;;  %v3035_v34 = vor.u32 %v3940_v30, %v3034_v28  ;;  %1309 = vmatpush.bf16.msra.mxu0 %v2779_v29 }
  0x24   :  { %v2762_v35 = vld [vmem:[#allocation6 + $0x80] sm:$0xf]  ;;  %v3872_v36 = vld [vmem:[#allocation6 + $0x8c] sm:$0xf0]  ;;  %v3163_v38 = vor.u32 %v3972_v32, %v3162_v31  ;;  %1323 = vmatpush.bf16.msra.mxu1 %v2907_v33  ;;  %v3882_v33 = vld [vmem:[#allocation6 + $0xe4] sm:$0xf] }
  0x25   :  { %v2890_v37 = vld [vmem:[#allocation6 + $0x180] sm:$0xf]  ;;  %v3904_v39 = vld [vmem:[#allocation6 + $0x18c] sm:$0xf0]  ;;  %v2763_v44 = vor.u32 %v3872_v36, %v2762_v35  ;;  %1337 = vmatpush.bf16.msra.mxu2 %v3035_v34  ;;  %v2812_v34 = vld [vmem:[#allocation6 + $0xf0] sm:$0xf0] }
  0x26   :  { %v3018_v40 = vld [vmem:[#allocation6 + $0x280] sm:$0xf]  ;;  %v3936_v41 = vld [vmem:[#allocation6 + $0x28c] sm:$0xf0]  ;;  %v2891_v45 = vor.u32 %v3904_v39, %v2890_v37  ;;  %1351 = vmatpush.bf16.msra.mxu3 %v3163_v38  ;;  %v3914_v37 = vld [vmem:[#allocation6 + $0x1e4] sm:$0xf] }
  0x27   :  { %v3146_v42 = vld [vmem:[#allocation6 + $0x380] sm:$0xf]  ;;  %v3968_v43 = vld [vmem:[#allocation6 + $0x38c] sm:$0xf0]  ;;  %v3019_v46 = vor.u32 %v3936_v41, %v3018_v40  ;;  %1310 = vmatpush.bf16.msra.mxu0 %v2763_v44  ;;  %v2940_v38 = vld [vmem:[#allocation6 + $0x1f0] sm:$0xf0] }
  0x28   :  { %v2746_v47 = vld [vmem:[#allocation6 + $0x60] sm:$0xf]  ;;  %v3868_v48 = vld [vmem:[#allocation6 + $0x6c] sm:$0xf0]  ;;  %v3147_v50 = vor.u32 %v3968_v43, %v3146_v42  ;;  %1324 = vmatpush.bf16.msra.mxu1 %v2891_v45  ;;  %v2815_v43 = vor.u32 %v3882_v33, %v2812_v34  ;;  %v2748_v33 = vld [vmem:[#allocation6 + $0x70] sm:$0xf0] }
  0x29   :  { %v2874_v49 = vld [vmem:[#allocation6 + $0x160] sm:$0xf]  ;;  %v3900_v51 = vld [vmem:[#allocation6 + $0x16c] sm:$0xf0]  ;;  %v2747_v56 = vor.u32 %v3868_v48, %v2746_v47  ;;  %1338 = vmatpush.bf16.msra.mxu2 %v3019_v46  ;;  %v2943_v47 = vor.u32 %v3914_v37, %v2940_v38  ;;  %v3878_v48 = vld [vmem:[#allocation6 + $0xc4] sm:$0xf] }
  0x2a   :  { %v3002_v52 = vld [vmem:[#allocation6 + $0x260] sm:$0xf]  ;;  %v3932_v53 = vld [vmem:[#allocation6 + $0x26c] sm:$0xf0]  ;;  %v2875_v57 = vor.u32 %v3900_v51, %v2874_v49  ;;  %1352 = vmatpush.bf16.msra.mxu3 %v3147_v50  ;;  %v2796_v49 = vld [vmem:[#allocation6 + $0xd0] sm:$0xf0] }
  0x2b   :  { %v3130_v54 = vld [vmem:[#allocation6 + $0x360] sm:$0xf]  ;;  %v3964_v55 = vld [vmem:[#allocation6 + $0x36c] sm:$0xf0]  ;;  %v3003_v58 = vor.u32 %v3932_v53, %v3002_v52  ;;  %1311 = vmatpush.bf16.msra.mxu0 %v2747_v56  ;;  %v3910_v50 = vld [vmem:[#allocation6 + $0x1c4] sm:$0xf] }
  0x2c   :  { %v2730_v59 = vld [vmem:[#allocation6 + $0x40] sm:$0xf]  ;;  %v3864_v60 = vld [vmem:[#allocation6 + $0x4c] sm:$0xf0]  ;;  %v3131_v62 = vor.u32 %v3964_v55, %v3130_v54  ;;  %1325 = vmatpush.bf16.msra.mxu1 %v2875_v57  ;;  %v2924_v51 = vld [vmem:[#allocation6 + $0x1d0] sm:$0xf0] }
  0x2d   :  { %v2858_v61 = vld [vmem:[#allocation6 + $0x140] sm:$0xf]  ;;  %v3896_v63 = vld [vmem:[#allocation6 + $0x14c] sm:$0xf0]  ;;  %v2731_v4 = vor.u32 %v3864_v60, %v2730_v59  ;;  %1339 = vmatpush.bf16.msra.mxu2 %v3003_v58  ;;  %v3851_v53 = vld [vmem:[#allocation3 + $0x14] sm:$0xf0]  ;;  %v2799_v60 = vor.u32 %v3878_v48, %v2796_v49 }
  0x2e   :  { %v2986_v0 = vld [vmem:[#allocation6 + $0x240] sm:$0xf]  ;;  %v3928_v1 = vld [vmem:[#allocation6 + $0x24c] sm:$0xf0]  ;;  %v2859_v5 = vor.u32 %v3896_v63, %v2858_v61  ;;  %1353 = vmatpush.bf16.msra.mxu3 %v3131_v62  ;;  %v3874_v62 = vld [vmem:[#allocation6 + $0xa4] sm:$0xf] }
  0x2f   :  { %v3114_v2 = vld [vmem:[#allocation6 + $0x340] sm:$0xf]  ;;  %v3960_v3 = vld [vmem:[#allocation6 + $0x34c] sm:$0xf0]  ;;  %v2987_v6 = vor.u32 %v3928_v1, %v2986_v0  ;;  %1312 = vmatpush.bf16.msra.mxu0 %v2731_v4  ;;  %v2780_v63 = vld [vmem:[#allocation6 + $0xb0] sm:$0xf0]  ;;  %v2927_v0 = vor.u32 %v3910_v50, %v2924_v51 }
  0x30   :  { %v2714_v7 = vld [vmem:[#allocation6 + $0x20] sm:$0xf]  ;;  %v3860_v8 = vld [vmem:[#allocation6 + $0x2c] sm:$0xf0]  ;;  %v3115_v10 = vor.u32 %v3960_v3, %v3114_v2  ;;  %1326 = vmatpush.bf16.msra.mxu1 %v2859_v5  ;;  %v3906_v1 = vld [vmem:[#allocation6 + $0x1a4] sm:$0xf] }
  0x31   :  { %v2842_v9 = vld [vmem:[#allocation6 + $0x120] sm:$0xf]  ;;  %v3892_v11 = vld [vmem:[#allocation6 + $0x12c] sm:$0xf0]  ;;  %v2715_v16 = vor.u32 %v3860_v8, %v2714_v7  ;;  %1340 = vmatpush.bf16.msra.mxu2 %v2987_v6  ;;  %v3848_v2 = vld [vmem:[#allocation3 + $0x4] sm:$0xf] }
  0x32   :  { %v2970_v12 = vld [vmem:[#allocation6 + $0x220] sm:$0xf]  ;;  %v3924_v13 = vld [vmem:[#allocation6 + $0x22c] sm:$0xf0]  ;;  %v2843_v19 = vor.u32 %v3892_v11, %v2842_v9  ;;  %1354 = vmatpush.bf16.msra.mxu3 %v3115_v10  ;;  %v2676_v3 = vld [vmem:[#allocation3 + $0x18] sm:$0xf0] }
  0x33   :  { %v3098_v14 = vld [vmem:[#allocation6 + $0x320] sm:$0xf]  ;;  %v3956_v15 = vld [vmem:[#allocation6 + $0x32c] sm:$0xf0]  ;;  %v2971_v20 = vor.u32 %v3924_v13, %v2970_v12  ;;  %1313 = vmatpush.bf16.msra.mxu0 %v2715_v16  ;;  %v2908_v4 = vld [vmem:[#allocation6 + $0x1b0] sm:$0xf0]  ;;  %v4374_v5 = vor.u32 %v3848_v2, %v2676_v3  ;;  %v2783_v13 = vor.u32 %v3874_v62, %v2780_v63 }
  0x34   :  { %v2698_v17 = vld [vmem:[#allocation6] sm:$0xf]  ;;  %v3856_v18 = vld [vmem:[#allocation6 + $0xc] sm:$0xf0]  ;;  %v3099_v24 = vor.u32 %v3956_v15, %v3098_v14  ;;  %1327 = vmatpush.bf16.msra.mxu1 %v2843_v19  ;;  %v2682_v6 = vld [vmem:[#allocation3 + $0x8] sm:$0xf] }
  0x35   :  { %v2826_v21 = vld [vmem:[#allocation6 + $0x100] sm:$0xf]  ;;  %v3888_v22 = vld [vmem:[#allocation6 + $0x10c] sm:$0xf0]  ;;  %v2699_v31 = vor.u32 %v3856_v18, %v2698_v17  ;;  %1341 = vmatpush.bf16.msra.mxu2 %v2971_v20  ;;  %v3870_v16 = vld [vmem:[#allocation6 + $0x84] sm:$0xf]  ;;  %v2911_v17 = vor.u32 %v3906_v1, %v2908_v4 }
  0x36   :  { %v2954_v23 = vld [vmem:[#allocation6 + $0x200] sm:$0xf]  ;;  %v3920_v25 = vld [vmem:[#allocation6 + $0x20c] sm:$0xf0]  ;;  %v2827_v35 = vor.u32 %v3888_v22, %v2826_v21  ;;  %1355 = vmatpush.bf16.msra.mxu3 %v3099_v24  ;;  %v2764_v18 = vld [vmem:[#allocation6 + $0x90] sm:$0xf0] }
  0x37   :  { %v3082_v26 = vld [vmem:[#allocation6 + $0x300] sm:$0xf]  ;;  %v3952_v27 = vld [vmem:[#allocation6 + $0x30c] sm:$0xf0]  ;;  %v2955_v36 = vor.u32 %v3920_v25, %v2954_v23  ;;  %1314 = vmatpush.bf16.msra.mxu0 %v2699_v31  ;;  %v3849_v19 = vld [vmem:[#allocation3 + $0xc] sm:$0xf] }
  0x38   :  { %v3322_v28 = vld [vmem:[#allocation6 + $0x4e0] sm:$0xf]  ;;  %v4012_v29 = vld [vmem:[#allocation6 + $0x4ec] sm:$0xf0]  ;;  %v3083_v39 = vor.u32 %v3952_v27, %v3082_v26  ;;  %1328 = vmatpush.bf16.msra.mxu1 %v2827_v35  ;;  %v2684_v20 = vld [vmem:[#allocation3 + $0x20] sm:$0xf0]  ;;  %v2767_v26 = vor.u32 %v3870_v16, %v2764_v18 }
  0x39   :  { %v3450_v30 = vld [vmem:[#allocation6 + $0x5e0] sm:$0xf]  ;;  %v4044_v32 = vld [vmem:[#allocation6 + $0x5ec] sm:$0xf0]  ;;  %v3323_v40 = vor.u32 %v4012_v29, %v3322_v28  ;;  %1342 = vmatpush.bf16.msra.mxu2 %v2955_v36  ;;  %v3902_v21 = vld [vmem:[#allocation6 + $0x184] sm:$0xf]  ;;  %v4380_v23 = vor.u32 %v3849_v19, %v2684_v20 }
  0x3a   :  { %v3306_v41 = vld [vmem:[#allocation6 + $0x4c0] sm:$0xf]  ;;  %v3451_v42 = vor.u32 %v4044_v32, %v3450_v30  ;;  %v4008_v44 = vld [vmem:[#allocation6 + $0x4cc] sm:$0xf0]  ;;  %1356 = vmatpush.bf16.msra.mxu3 %v3083_v39  ;;  %v2892_v22 = vld [vmem:[#allocation6 + $0x190] sm:$0xf0] }
  0x3b   :  { %v3434_v45 = vld [vmem:[#allocation6 + $0x5c0] sm:$0xf]  ;;  %v4040_v46 = vld [vmem:[#allocation6 + $0x5cc] sm:$0xf0]  ;;  %1363 = vmatpush.bf16.msrb.mxu0 %v3323_v40  ;;  %v3307_v54 = vor.u32 %v4008_v44, %v3306_v41  ;;  %1329 = vmatmul.bf16.vlgmr.msra.gmra.mxu1 %v4374_v5  ;;  %v2895_v30 = vor.u32 %v3902_v21, %v2892_v22  ;;  %v3866_v32 = vld [vmem:[#allocation6 + $0x64] sm:$0xf] }
  0x3c   :  { %v2674_v52 = vld [vmem:[#allocation3] sm:$0xf]  ;;  %v3290_v55 = vld [vmem:[#allocation6 + $0x4a0] sm:$0xf]  ;;  %1377 = vmatpush.bf16.msrb.mxu1 %v3451_v42  ;;  %v3435_v59 = vor.u32 %v4040_v46, %v3434_v45  ;;  %v3898_v34 = vld [vmem:[#allocation6 + $0x164] sm:$0xf]  ;;  %v2751_v38 = vor.u32 %v3866_v32, %v2748_v33 }
  0x3d   :  { %v4004_v56 = vld [vmem:[#allocation6 + $0x4ac] sm:$0xf0]  ;;  %v3418_v57 = vld [vmem:[#allocation6 + $0x5a0] sm:$0xf]  ;;  %v4371_v58 = vor.u32 %v3851_v53, %v2674_v52  ;;  %1391 = vmatpush.bf16.msrb.mxu2 %v2815_v43  ;;  %v2876_v35 = vld [vmem:[#allocation6 + $0x170] sm:$0xf0]  ;;  %1357 = vmatmul.bf16.vlgmr.msra.gmra.mxu3 %v4380_v23 }
  0x3e   :  { %v4036_v61 = vld [vmem:[#allocation6 + $0x5ac] sm:$0xf0]  ;;  %1405 = vmatpush.bf16.msrb.mxu3 %v2943_v47  ;;  %v3291_v8 = vor.u32 %v4004_v56, %v3290_v55  ;;  %v3274_v9 = vld [vmem:[#allocation6 + $0x480] sm:$0xf]  ;;  %v2879_v42 = vor.u32 %v3898_v34, %v2876_v35  ;;  %v3862_v44 = vld [vmem:[#allocation6 + $0x44] sm:$0xf] }
  0x3f   :  { %1315 = vmatmul.bf16.vlgmr.msra.gmra.mxu0 %v4371_v58  ;;  %v3852_v7 = vld [vmem:[#allocation3 + $0x1c] sm:$0xf0]  ;;  %v3419_v12 = vor.u32 %v4036_v61, %v3418_v57  ;;  %v3402_v14 = vld [vmem:[#allocation6 + $0x580] sm:$0xf]  ;;  %v2732_v45 = vld [vmem:[#allocation6 + $0x50] sm:$0xf0] }
  0x40   :  { %1364 = vmatpush.bf16.msrb.mxu0 %v3307_v54  ;;  %v4000_v10 = vld [vmem:[#allocation6 + $0x48c] sm:$0xf0]  ;;  %v4376_v11 = vor.u32 %v3852_v7, %v2682_v6  ;;  %1378 = vmatpush.bf16.msrb.mxu1 %v3435_v59  ;;  %v3258_v27 = vld [vmem:[#allocation6 + $0x460] sm:$0xf]  ;;  %v3894_v46 = vld [vmem:[#allocation6 + $0x144] sm:$0xf]  ;;  %v2735_v50 = vor.u32 %v3862_v44, %v2732_v45 }
  0x41   :  { %1392 = vmatpush.bf16.msrb.mxu2 %v2799_v60  ;;  %v4032_v15 = vld [vmem:[#allocation6 + $0x58c] sm:$0xf0]  ;;  %v3275_v24 = vor.u32 %v4000_v10, %v3274_v9  ;;  %v3386_v29 = vld [vmem:[#allocation6 + $0x560] sm:$0xf]  ;;  %v2860_v47 = vld [vmem:[#allocation6 + $0x150] sm:$0xf0] }
  0x42   :  { %1406 = vmatpush.bf16.msrb.mxu3 %v2927_v0  ;;  %1343 = vmatmul.bf16.vlgmr.msra.gmra.mxu2 %v4376_v11  ;;  %v3403_v25 = vor.u32 %v4032_v15, %v3402_v14  ;;  %v3996_v28 = vld [vmem:[#allocation6 + $0x46c] sm:$0xf0]  ;;  %v3242_v39 = vld [vmem:[#allocation6 + $0x440] sm:$0xf]  ;;  %v2863_v54 = vor.u32 %v3894_v46, %v2860_v47  ;;  %v3858_v56 = vld [vmem:[#allocation6 + $0x24] sm:$0xf] }
  0x43   :  { %v4028_v31 = vld [vmem:[#allocation6 + $0x56c] sm:$0xf0]  ;;  %v3259_v36 = vor.u32 %v3996_v28, %v3258_v27  ;;  %v3370_v41 = vld [vmem:[#allocation6 + $0x540] sm:$0xf]  ;;  %v2716_v57 = vld [vmem:[#allocation6 + $0x30] sm:$0xf0] }
  0x44   :  { %1365 = vmatpush.bf16.msrb.mxu0 %v3291_v8  ;;  %1379 = vmatpush.bf16.msrb.mxu1 %v3419_v12  ;;  %v3387_v37 = vor.u32 %v4028_v31, %v3386_v29  ;;  %v3992_v40 = vld [vmem:[#allocation6 + $0x44c] sm:$0xf0]  ;;  %v3226_v51 = vld [vmem:[#allocation6 + $0x420] sm:$0xf]  ;;  %v3890_v59 = vld [vmem:[#allocation6 + $0x124] sm:$0xf]  ;;  %v2719_v2 = vor.u32 %v3858_v56, %v2716_v57 }
  0x45   :  { %1393 = vmatpush.bf16.msrb.mxu2 %v2783_v13  ;;  %v4024_v43 = vld [vmem:[#allocation6 + $0x54c] sm:$0xf0]  ;;  %v3243_v48 = vor.u32 %v3992_v40, %v3242_v39  ;;  %v3354_v53 = vld [vmem:[#allocation6 + $0x520] sm:$0xf]  ;;  %v2844_v60 = vld [vmem:[#allocation6 + $0x130] sm:$0xf0] }
  0x46   :  { %1407 = vmatpush.bf16.msrb.mxu3 %v2911_v17  ;;  %v3371_v49 = vor.u32 %v4024_v43, %v3370_v41  ;;  %v3988_v52 = vld [vmem:[#allocation6 + $0x42c] sm:$0xf0]  ;;  %v3210_v62 = vld [vmem:[#allocation6 + $0x400] sm:$0xf]  ;;  %v3854_v4 = vld [vmem:[#allocation6 + $0x4] sm:$0xf]  ;;  %v2847_v7 = vor.u32 %v3890_v59, %v2844_v60 }
  0x47   :  { %v4020_v55 = vld [vmem:[#allocation6 + $0x52c] sm:$0xf0]  ;;  %v3227_v61 = vor.u32 %v3988_v52, %v3226_v51  ;;  %v3338_v0 = vld [vmem:[#allocation6 + $0x500] sm:$0xf]  ;;  %v2700_v6 = vld [vmem:[#allocation6 + $0x10] sm:$0xf0] }
  0x48   :  { %1366 = vmatpush.bf16.msrb.mxu0 %v3275_v24  ;;  %1380 = vmatpush.bf16.msrb.mxu1 %v3403_v25  ;;  %v3984_v63 = vld [vmem:[#allocation6 + $0x40c] sm:$0xf0]  ;;  %v3355_v1 = vor.u32 %v4020_v55, %v3354_v53  ;;  %v3886_v8 = vld [vmem:[#allocation6 + $0x104] sm:$0xf]  ;;  %v2828_v9 = vld [vmem:[#allocation6 + $0x110] sm:$0xf0]  ;;  %v2703_v20 = vor.u32 %v3854_v4, %v2700_v6 }
  0x49   :  { %1394 = vmatpush.bf16.msrb.mxu2 %v2767_v26  ;;  %v4016_v3 = vld [vmem:[#allocation6 + $0x50c] sm:$0xf0]  ;;  %v3946_v10 = vld [vmem:[#allocation6 + $0x2e4] sm:$0xf]  ;;  %v3068_v12 = vld [vmem:[#allocation6 + $0x2f0] sm:$0xf0]  ;;  %v3211_v15 = vor.u32 %v3984_v63, %v3210_v62  ;;  %v2831_v25 = vor.u32 %v3886_v8, %v2828_v9 }
  0x4a   :  { %1408 = vmatpush.bf16.msrb.mxu3 %v2895_v30  ;;  %v3978_v13 = vld [vmem:[#allocation6 + $0x3e4] sm:$0xf]  ;;  %v3196_v14 = vld [vmem:[#allocation6 + $0x3f0] sm:$0xf0]  ;;  %v3339_v19 = vor.u32 %v4016_v3, %v3338_v0  ;;  %v2690_v22 = vld [vmem:[#allocation3 + $0x10] sm:$0xf]  ;;  %v3071_v26 = vor.u32 %v3946_v10, %v3068_v12 }
  0x4b   :  { %v4010_v16 = vld [vmem:[#allocation6 + $0x4e4] sm:$0xf]  ;;  %v3324_v17 = vld [vmem:[#allocation6 + $0x4f0] sm:$0xf0]  ;;  %v3853_v24 = vld [vmem:[#allocation3 + $0x24] sm:$0xf0]  ;;  %v3199_v29 = vor.u32 %v3978_v13, %v3196_v14 }
  0x4c   :  { %1367 = vmatpush.bf16.msrb.mxu0 %v3259_v36  ;;  %1381 = vmatpush.bf16.msrb.mxu1 %v3387_v37  ;;  %v4042_v18 = vld [vmem:[#allocation6 + $0x5e4] sm:$0xf]  ;;  %v3452_v21 = vld [vmem:[#allocation6 + $0x5f0] sm:$0xf0]  ;;  %v2692_v28 = vld [vmem:[#allocation3 + $0x28] sm:$0xf0]  ;;  %v3327_v30 = vor.u32 %v4010_v16, %v3324_v17  ;;  %v4383_v35 = vor.u32 %v3853_v24, %v2690_v22 }
  0x4d   :  { %1395 = vmatpush.bf16.msrb.mxu2 %v2751_v38  ;;  %v3850_v27 = vld [vmem:[#allocation3 + $0x14] sm:$0xf]  ;;  %v3052_v32 = vld [vmem:[#allocation6 + $0x2d0] sm:$0xf0]  ;;  %v3455_v34 = vor.u32 %v4042_v18, %v3452_v21 }
  0x4e   :  { %1409 = vmatpush.bf16.msrb.mxu3 %v2879_v42  ;;  %v3942_v31 = vld [vmem:[#allocation6 + $0x2c4] sm:$0xf]  ;;  %v3180_v36 = vld [vmem:[#allocation6 + $0x3d0] sm:$0xf0]  ;;  %v4385_v39 = vor.u32 %v3850_v27, %v2692_v28 }
  0x4f   :  { %v3974_v33 = vld [vmem:[#allocation6 + $0x3c4] sm:$0xf]  ;;  %v3308_v38 = vld [vmem:[#allocation6 + $0x4d0] sm:$0xf0]  ;;  %v3055_v42 = vor.u32 %v3942_v31, %v3052_v32 }
  0x50   :  { %1368 = vmatpush.bf16.msrb.mxu0 %v3243_v48  ;;  %1382 = vmatpush.bf16.msrb.mxu1 %v3371_v49  ;;  %v4006_v37 = vld [vmem:[#allocation6 + $0x4c4] sm:$0xf]  ;;  %v3436_v41 = vld [vmem:[#allocation6 + $0x5d0] sm:$0xf0]  ;;  %v3183_v43 = vor.u32 %v3974_v33, %v3180_v36 }
  0x51   :  { %1396 = vmatpush.bf16.msrb.mxu2 %v2735_v50  ;;  %v4038_v40 = vld [vmem:[#allocation6 + $0x5c4] sm:$0xf]  ;;  %v3311_v44 = vor.u32 %v4006_v37, %v3308_v38  ;;  %v3036_v46 = vld [vmem:[#allocation6 + $0x2b0] sm:$0xf0] }
  0x52   :  { %1410 = vmatpush.bf16.msrb.mxu3 %v2863_v54  ;;  %v3938_v45 = vld [vmem:[#allocation6 + $0x2a4] sm:$0xf]  ;;  %v3439_v48 = vor.u32 %v4038_v40, %v3436_v41  ;;  %v3164_v49 = vld [vmem:[#allocation6 + $0x3b0] sm:$0xf0] }
  0x53   :  { %v3970_v47 = vld [vmem:[#allocation6 + $0x3a4] sm:$0xf]  ;;  %v3292_v51 = vld [vmem:[#allocation6 + $0x4b0] sm:$0xf0]  ;;  %v3039_v54 = vor.u32 %v3938_v45, %v3036_v46 }
  0x54   :  { %1369 = vmatpush.bf16.msrb.mxu0 %v3227_v61  ;;  %1383 = vmatpush.bf16.msrb.mxu1 %v3355_v1  ;;  %v4002_v50 = vld [vmem:[#allocation6 + $0x4a4] sm:$0xf]  ;;  %v3420_v53 = vld [vmem:[#allocation6 + $0x5b0] sm:$0xf0]  ;;  %v3167_v55 = vor.u32 %v3970_v47, %v3164_v49 }
  0x55   :  { %1397 = vmatpush.bf16.msrb.mxu2 %v2719_v2  ;;  %v4034_v52 = vld [vmem:[#allocation6 + $0x5a4] sm:$0xf]  ;;  %v3295_v56 = vor.u32 %v4002_v50, %v3292_v51  ;;  %v3020_v59 = vld [vmem:[#allocation6 + $0x290] sm:$0xf0] }
  0x56   :  { %1411 = vmatpush.bf16.msrb.mxu3 %v2847_v7  ;;  %v3934_v57 = vld [vmem:[#allocation6 + $0x284] sm:$0xf]  ;;  %v3423_v61 = vor.u32 %v4034_v52, %v3420_v53  ;;  %v3148_v62 = vld [vmem:[#allocation6 + $0x390] sm:$0xf0] }
  0x57   :  { %v3966_v60 = vld [vmem:[#allocation6 + $0x384] sm:$0xf]  ;;  %v3276_v0 = vld [vmem:[#allocation6 + $0x490] sm:$0xf0]  ;;  %v3023_v3 = vor.u32 %v3934_v57, %v3020_v59  ;;  %v3885_v57 = vld [vmem:[#allocation6 + $0xf4] sm:$0xf0] }
  0x58   :  { %1370 = vmatpush.bf16.msrb.mxu0 %v3211_v15  ;;  %1384 = vmatpush.bf16.msrb.mxu1 %v3339_v19  ;;  %v3998_v63 = vld [vmem:[#allocation6 + $0x484] sm:$0xf]  ;;  %v3404_v2 = vld [vmem:[#allocation6 + $0x590] sm:$0xf0]  ;;  %v3151_v4 = vor.u32 %v3966_v60, %v3148_v62  ;;  %v2946_v59 = vld [vmem:[#allocation6 + $0x1e8] sm:$0xf] }
  0x59   :  { %1398 = vmatpush.bf16.msrb.mxu2 %v2703_v20  ;;  %v4030_v1 = vld [vmem:[#allocation6 + $0x584] sm:$0xf]  ;;  %v3279_v6 = vor.u32 %v3998_v63, %v3276_v0  ;;  %v3004_v8 = vld [vmem:[#allocation6 + $0x270] sm:$0xf0]  ;;  %v3074_v62 = vld [vmem:[#allocation6 + $0x2e8] sm:$0xf] }
  0x5a   :  { %1412 = vmatpush.bf16.msrb.mxu3 %v2831_v25  ;;  %v3930_v7 = vld [vmem:[#allocation6 + $0x264] sm:$0xf]  ;;  %v3407_v10 = vor.u32 %v4030_v1, %v3404_v2  ;;  %v3132_v12 = vld [vmem:[#allocation6 + $0x370] sm:$0xf0]  ;;  %v3949_v63 = vld [vmem:[#allocation6 + $0x2f4] sm:$0xf0] }
  0x5b   :  { %1371 = vmatmul.bf16.vlgmr.msrb.gmra.mxu0 %v4383_v35  ;;  %1385 = vmatmul.bf16.vlgmr.msrb.gmra.mxu1 %v4385_v39  ;;  %v3962_v9 = vld [vmem:[#allocation6 + $0x364] sm:$0xf]  ;;  %v3260_v14 = vld [vmem:[#allocation6 + $0x470] sm:$0xf0]  ;;  %v3007_v17 = vor.u32 %v3930_v7, %v3004_v8  ;;  %v3202_v2 = vld [vmem:[#allocation6 + $0x3e8] sm:$0xf]  ;;  %v3075_v8 = vor.u32 %v3949_v63, %v3074_v62 }
  0x5c   :  { %1419 = vmatpush.bf16.msra.mxu0 %v3071_v26  ;;  %1433 = vmatpush.bf16.msra.mxu1 %v3199_v29  ;;  %v3994_v13 = vld [vmem:[#allocation6 + $0x464] sm:$0xf]  ;;  %v3388_v16 = vld [vmem:[#allocation6 + $0x570] sm:$0xf0]  ;;  %v3135_v18 = vor.u32 %v3962_v9, %v3132_v12  ;;  %v2802_v9 = vld [vmem:[#allocation6 + $0xc8] sm:$0xf] }
  0x5d   :  { %1447 = vmatpush.bf16.msra.mxu2 %v3327_v30  ;;  %1413 = vmatmul.bf16.vlgmr.msrb.gmra.mxu3 %v4374_v5  ;;  %v4026_v15 = vld [vmem:[#allocation6 + $0x564] sm:$0xf]  ;;  %v3263_v19 = vor.u32 %v3994_v13, %v3260_v14  ;;  %v2988_v21 = vld [vmem:[#allocation6 + $0x250] sm:$0xf0]  ;;  %v2930_v12 = vld [vmem:[#allocation6 + $0x1c8] sm:$0xf] }
  0x5e   :  { %1461 = vmatpush.bf16.msra.mxu3 %v3455_v34  ;;  %1399 = vmatmul.bf16.vlgmr.msrb.gmra.mxu2 %v4371_v58  ;;  %v3926_v20 = vld [vmem:[#allocation6 + $0x244] sm:$0xf]  ;;  %v3391_v24 = vor.u32 %v4026_v15, %v3388_v16  ;;  %v3116_v25 = vld [vmem:[#allocation6 + $0x350] sm:$0xf0]  ;;  %v3913_v14 = vld [vmem:[#allocation6 + $0x1d4] sm:$0xf0] }
  0x5f   :  { %v3958_v22 = vld [vmem:[#allocation6 + $0x344] sm:$0xf]  ;;  %v3244_v27 = vld [vmem:[#allocation6 + $0x450] sm:$0xf0]  ;;  %v2991_v30 = vor.u32 %v3926_v20, %v2988_v21  ;;  %v3058_v15 = vld [vmem:[#allocation6 + $0x2c8] sm:$0xf]  ;;  %v2931_v20 = vor.u32 %v3913_v14, %v2930_v12 }
  0x60   :  { %1420 = vmatpush.bf16.msra.mxu0 %v3055_v42  ;;  %1434 = vmatpush.bf16.msra.mxu1 %v3183_v43  ;;  %v3990_v26 = vld [vmem:[#allocation6 + $0x444] sm:$0xf]  ;;  %v3372_v29 = vld [vmem:[#allocation6 + $0x550] sm:$0xf0]  ;;  %v3119_v31 = vor.u32 %v3958_v22, %v3116_v25  ;;  %v3945_v16 = vld [vmem:[#allocation6 + $0x2d4] sm:$0xf0] }
  0x61   :  { %1448 = vmatpush.bf16.msra.mxu2 %v3311_v44  ;;  %v4022_v28 = vld [vmem:[#allocation6 + $0x544] sm:$0xf]  ;;  %v3247_v32 = vor.u32 %v3990_v26, %v3244_v27  ;;  %v2972_v34 = vld [vmem:[#allocation6 + $0x230] sm:$0xf0]  ;;  %v3059_v21 = vor.u32 %v3945_v16, %v3058_v15  ;;  %v2786_v22 = vld [vmem:[#allocation6 + $0xa8] sm:$0xf] }
  0x62   :  { %1462 = vmatpush.bf16.msra.mxu3 %v3439_v48  ;;  %v3922_v33 = vld [vmem:[#allocation6 + $0x224] sm:$0xf]  ;;  %v3375_v37 = vor.u32 %v4022_v28, %v3372_v29  ;;  %v3100_v38 = vld [vmem:[#allocation6 + $0x330] sm:$0xf0]  ;;  %v2914_v25 = vld [vmem:[#allocation6 + $0x1a8] sm:$0xf] }
  0x63   :  { %v3954_v36 = vld [vmem:[#allocation6 + $0x324] sm:$0xf]  ;;  %v3228_v41 = vld [vmem:[#allocation6 + $0x430] sm:$0xf0]  ;;  %v2975_v44 = vor.u32 %v3922_v33, %v2972_v34  ;;  %v3909_v27 = vld [vmem:[#allocation6 + $0x1b4] sm:$0xf0] }
  0x64   :  { %1421 = vmatpush.bf16.msra.mxu0 %v3039_v54  ;;  %1435 = vmatpush.bf16.msra.mxu1 %v3167_v55  ;;  %v3986_v40 = vld [vmem:[#allocation6 + $0x424] sm:$0xf]  ;;  %v3356_v43 = vld [vmem:[#allocation6 + $0x530] sm:$0xf0]  ;;  %v3103_v47 = vor.u32 %v3954_v36, %v3100_v38  ;;  %v3042_v28 = vld [vmem:[#allocation6 + $0x2a8] sm:$0xf]  ;;  %v2915_v33 = vor.u32 %v3909_v27, %v2914_v25 }
  0x65   :  { %1449 = vmatpush.bf16.msra.mxu2 %v3295_v56  ;;  %v4018_v42 = vld [vmem:[#allocation6 + $0x524] sm:$0xf]  ;;  %v2956_v46 = vld [vmem:[#allocation6 + $0x210] sm:$0xf0]  ;;  %v3231_v48 = vor.u32 %v3986_v40, %v3228_v41  ;;  %v2818_v56 = vld [vmem:[#allocation6 + $0xe8] sm:$0xf] }
  0x66   :  { %1463 = vmatpush.bf16.msra.mxu3 %v3423_v61  ;;  %v3918_v45 = vld [vmem:[#allocation6 + $0x204] sm:$0xf]  ;;  %v3084_v50 = vld [vmem:[#allocation6 + $0x310] sm:$0xf0]  ;;  %v3359_v52 = vor.u32 %v4018_v42, %v3356_v43  ;;  %v3917_v61 = vld [vmem:[#allocation6 + $0x1f4] sm:$0xf0] }
  0x67   :  { %v3950_v49 = vld [vmem:[#allocation6 + $0x304] sm:$0xf]  ;;  %v3212_v53 = vld [vmem:[#allocation6 + $0x410] sm:$0xf0]  ;;  %v2959_v60 = vor.u32 %v3918_v45, %v2956_v46  ;;  %v2947_v7 = vor.u32 %v3917_v61, %v2946_v59  ;;  %v3941_v29 = vld [vmem:[#allocation6 + $0x2b4] sm:$0xf0] }
  0x68   :  { %1422 = vmatpush.bf16.msra.mxu0 %v3023_v3  ;;  %1436 = vmatpush.bf16.msra.mxu1 %v3151_v4  ;;  %v3982_v51 = vld [vmem:[#allocation6 + $0x404] sm:$0xf]  ;;  %v3340_v55 = vld [vmem:[#allocation6 + $0x510] sm:$0xf0]  ;;  %v3087_v0 = vor.u32 %v3950_v49, %v3084_v50  ;;  %v3981_v3 = vld [vmem:[#allocation6 + $0x3f4] sm:$0xf0]  ;;  %v3043_v34 = vor.u32 %v3941_v29, %v3042_v28 }
  0x69   :  { %1450 = vmatpush.bf16.msra.mxu2 %v3279_v6  ;;  %v4014_v54 = vld [vmem:[#allocation6 + $0x504] sm:$0xf]  ;;  %v3215_v1 = vor.u32 %v3982_v51, %v3212_v53  ;;  %v2819_v6 = vor.u32 %v3885_v57, %v2818_v56  ;;  %v3203_v13 = vor.u32 %v3981_v3, %v3202_v2  ;;  %v2770_v36 = vld [vmem:[#allocation6 + $0x88] sm:$0xf]  ;;  %v3905_v41 = vld [vmem:[#allocation6 + $0x194] sm:$0xf0] }
  0x6a   :  { %1464 = vmatpush.bf16.msra.mxu3 %v3407_v10  ;;  %v3343_v4 = vor.u32 %v4014_v54, %v3340_v55  ;;  %v3881_v10 = vld [vmem:[#allocation6 + $0xd4] sm:$0xf0]  ;;  %v2898_v38 = vld [vmem:[#allocation6 + $0x188] sm:$0xf] }
  0x6b   :  { %v3026_v42 = vld [vmem:[#allocation6 + $0x288] sm:$0xf]  ;;  %v3937_v43 = vld [vmem:[#allocation6 + $0x294] sm:$0xf0] }
  0x6c   :  { %1423 = vmatpush.bf16.msra.mxu0 %v3007_v17  ;;  %1437 = vmatpush.bf16.msra.mxu1 %v3135_v18  ;;  %v3186_v17 = vld [vmem:[#allocation6 + $0x3c8] sm:$0xf]  ;;  %v3977_v18 = vld [vmem:[#allocation6 + $0x3d4] sm:$0xf0] }
  0x6d   :  { %1451 = vmatpush.bf16.msra.mxu2 %v3263_v19  ;;  %v2803_v19 = vor.u32 %v3881_v10, %v2802_v9  ;;  %v3187_v26 = vor.u32 %v3977_v18, %v3186_v17  ;;  %v3969_v45 = vld [vmem:[#allocation6 + $0x394] sm:$0xf0]  ;;  %v2754_v49 = vld [vmem:[#allocation6 + $0x68] sm:$0xf] }
  0x6e   :  { %1465 = vmatpush.bf16.msra.mxu3 %v3391_v24  ;;  %v3877_v24 = vld [vmem:[#allocation6 + $0xb4] sm:$0xf0]  ;;  %v2882_v51 = vld [vmem:[#allocation6 + $0x168] sm:$0xf] }
  0x6f   :  { %v3869_v50 = vld [vmem:[#allocation6 + $0x74] sm:$0xf0]  ;;  %v3010_v54 = vld [vmem:[#allocation6 + $0x268] sm:$0xf] }
  0x70   :  { %1424 = vmatpush.bf16.msra.mxu0 %v2991_v30  ;;  %1438 = vmatpush.bf16.msra.mxu1 %v3119_v31  ;;  %v3170_v30 = vld [vmem:[#allocation6 + $0x3a8] sm:$0xf]  ;;  %v3973_v31 = vld [vmem:[#allocation6 + $0x3b4] sm:$0xf0]  ;;  %v2755_v59 = vor.u32 %v3869_v50, %v2754_v49 }
  0x71   :  { %1452 = vmatpush.bf16.msra.mxu2 %v3247_v32  ;;  %v2787_v32 = vor.u32 %v3877_v24, %v2786_v22  ;;  %v3171_v40 = vor.u32 %v3973_v31, %v3170_v30  ;;  %v3901_v53 = vld [vmem:[#allocation6 + $0x174] sm:$0xf0]  ;;  %v3138_v56 = vld [vmem:[#allocation6 + $0x368] sm:$0xf] }
  0x72   :  { %1466 = vmatpush.bf16.msra.mxu3 %v3375_v37  ;;  %v3873_v37 = vld [vmem:[#allocation6 + $0x94] sm:$0xf0]  ;;  %v2738_v62 = vld [vmem:[#allocation6 + $0x48] sm:$0xf] }
  0x73   :  { %v2771_v46 = vor.u32 %v3873_v37, %v2770_v36  ;;  %v3933_v55 = vld [vmem:[#allocation6 + $0x274] sm:$0xf0]  ;;  %v2994_v3 = vld [vmem:[#allocation6 + $0x248] sm:$0xf] }
  0x74   :  { %1425 = vmatpush.bf16.msra.mxu0 %v2975_v44  ;;  %1439 = vmatpush.bf16.msra.mxu1 %v3103_v47  ;;  %v3154_v44 = vld [vmem:[#allocation6 + $0x388] sm:$0xf]  ;;  %v2899_v47 = vor.u32 %v3905_v41, %v2898_v38  ;;  %v3965_v57 = vld [vmem:[#allocation6 + $0x374] sm:$0xf0]  ;;  %v3011_v61 = vor.u32 %v3933_v55, %v3010_v54  ;;  %v3883_v41 = vld [vmem:[#allocation6 + $0xec] sm:$0xf] }
  0x75   :  { %1453 = vmatpush.bf16.msra.mxu2 %v3231_v48  ;;  %v3027_v48 = vor.u32 %v3937_v43, %v3026_v42  ;;  %v3865_v63 = vld [vmem:[#allocation6 + $0x54] sm:$0xf0]  ;;  %v2722_v12 = vld [vmem:[#allocation6 + $0x28] sm:$0xf]  ;;  %v2820_v42 = vld [vmem:[#allocation6 + $0xf8] sm:$0xf0] }
  0x76   :  { %1467 = vmatpush.bf16.msra.mxu3 %v3359_v52  ;;  %v3155_v52 = vor.u32 %v3969_v45, %v3154_v44  ;;  %v3897_v2 = vld [vmem:[#allocation6 + $0x154] sm:$0xf0]  ;;  %v2850_v14 = vld [vmem:[#allocation6 + $0x128] sm:$0xf]  ;;  %v3915_v45 = vld [vmem:[#allocation6 + $0x1ec] sm:$0xf]  ;;  %v2823_v50 = vor.u32 %v3883_v41, %v2820_v42 }
  0x77   :  { %v3893_v16 = vld [vmem:[#allocation6 + $0x134] sm:$0xf0]  ;;  %v2978_v17 = vld [vmem:[#allocation6 + $0x228] sm:$0xf] }
  0x78   :  { %1426 = vmatpush.bf16.msra.mxu0 %v2959_v60  ;;  %1440 = vmatpush.bf16.msra.mxu1 %v3087_v0  ;;  %v2883_v60 = vor.u32 %v3901_v53, %v2882_v51  ;;  %v2866_v0 = vld [vmem:[#allocation6 + $0x148] sm:$0xf]  ;;  %v3925_v18 = vld [vmem:[#allocation6 + $0x234] sm:$0xf0]  ;;  %v2851_v25 = vor.u32 %v3893_v16, %v2850_v14 }
  0x79   :  { %1454 = vmatpush.bf16.msra.mxu2 %v3215_v1  ;;  %v3139_v1 = vor.u32 %v3965_v57, %v3138_v56  ;;  %v2867_v9 = vor.u32 %v3897_v2, %v2866_v0  ;;  %v2706_v22 = vld [vmem:[#allocation6 + $0x8] sm:$0xf]  ;;  %v3857_v24 = vld [vmem:[#allocation6 + $0x14] sm:$0xf0]  ;;  %v3879_v56 = vld [vmem:[#allocation6 + $0xcc] sm:$0xf] }
  0x7a   :  { %1468 = vmatpush.bf16.msra.mxu3 %v3343_v4  ;;  %v3929_v4 = vld [vmem:[#allocation6 + $0x254] sm:$0xf0]  ;;  %v2834_v27 = vld [vmem:[#allocation6 + $0x108] sm:$0xf]  ;;  %v2707_v38 = vor.u32 %v3857_v24, %v2706_v22  ;;  %v2804_v57 = vld [vmem:[#allocation6 + $0xd8] sm:$0xf0] }
  0x7b   :  { %1427 = vmatmul.bf16.vlgmr.msra.gmra.mxu0 %v4376_v11  ;;  %1441 = vmatmul.bf16.vlgmr.msra.gmra.mxu1 %v4380_v23  ;;  %v2995_v10 = vor.u32 %v3929_v4, %v2994_v3  ;;  %v3889_v28 = vld [vmem:[#allocation6 + $0x114] sm:$0xf0]  ;;  %v2962_v29 = vld [vmem:[#allocation6 + $0x208] sm:$0xf]  ;;  %v2900_v22 = vld [vmem:[#allocation6 + $0x198] sm:$0xf0] }
  0x7c   :  { %1475 = vmatpush.bf16.msrb.mxu0 %v2819_v6  ;;  %1489 = vmatpush.bf16.msrb.mxu1 %v2947_v7  ;;  %v3122_v6 = vld [vmem:[#allocation6 + $0x348] sm:$0xf]  ;;  %v3961_v7 = vld [vmem:[#allocation6 + $0x354] sm:$0xf0]  ;;  %v2835_v43 = vor.u32 %v3889_v28, %v2834_v27 }
  0x7d   :  { %1503 = vmatpush.bf16.msrb.mxu2 %v3075_v8  ;;  %1469 = vmatmul.bf16.vlgmr.msra.gmra.mxu3 %v4385_v39  ;;  %v2739_v8 = vor.u32 %v3865_v63, %v2738_v62  ;;  %v3123_v15 = vor.u32 %v3961_v7, %v3122_v6  ;;  %v3921_v31 = vld [vmem:[#allocation6 + $0x214] sm:$0xf0]  ;;  %v3458_v37 = vld [vmem:[#allocation6 + $0x5e8] sm:$0xf]  ;;  %v2807_v63 = vor.u32 %v3879_v56, %v2804_v57  ;;  %v3875_v6 = vld [vmem:[#allocation6 + $0xac] sm:$0xf] }
  0x7e   :  { %1517 = vmatpush.bf16.msrb.mxu3 %v3203_v13  ;;  %1455 = vmatmul.bf16.vlgmr.msra.gmra.mxu2 %v4383_v35  ;;  %v3861_v13 = vld [vmem:[#allocation6 + $0x34] sm:$0xf0]  ;;  %v2963_v44 = vor.u32 %v3921_v31, %v2962_v29  ;;  %v3314_v51 = vld [vmem:[#allocation6 + $0x4c8] sm:$0xf]  ;;  %v2788_v7 = vld [vmem:[#allocation6 + $0xb8] sm:$0xf0] }
  0x7f   :  { %v4013_v36 = vld [vmem:[#allocation6 + $0x4f4] sm:$0xf0]  ;;  %v3442_v53 = vld [vmem:[#allocation6 + $0x5c8] sm:$0xf] }
  0x80   :  { %1476 = vmatpush.bf16.msrb.mxu0 %v2803_v19  ;;  %1490 = vmatpush.bf16.msrb.mxu1 %v2931_v20  ;;  %v3106_v19 = vld [vmem:[#allocation6 + $0x328] sm:$0xf]  ;;  %v3957_v20 = vld [vmem:[#allocation6 + $0x334] sm:$0xf0] }
  0x81   :  { %1504 = vmatpush.bf16.msrb.mxu2 %v3059_v21  ;;  %v2723_v21 = vor.u32 %v3861_v13, %v2722_v12  ;;  %v3107_v30 = vor.u32 %v3957_v20, %v3106_v19  ;;  %v4041_v55 = vld [vmem:[#allocation6 + $0x5d4] sm:$0xf0]  ;;  %v3298_v0 = vld [vmem:[#allocation6 + $0x4a8] sm:$0xf]  ;;  %v2791_v13 = vor.u32 %v3875_v6, %v2788_v7  ;;  %v3871_v19 = vld [vmem:[#allocation6 + $0x8c] sm:$0xf] }
  0x82   :  { %1518 = vmatpush.bf16.msrb.mxu3 %v3187_v26  ;;  %v2979_v26 = vor.u32 %v3925_v18, %v2978_v17  ;;  %v3443_v62 = vor.u32 %v4041_v55, %v3442_v53  ;;  %v3426_v2 = vld [vmem:[#allocation6 + $0x5a8] sm:$0xf]  ;;  %v4037_v4 = vld [vmem:[#allocation6 + $0x5b4] sm:$0xf0]  ;;  %v2772_v20 = vld [vmem:[#allocation6 + $0x98] sm:$0xf0] }
  0x83   :  { %v3427_v12 = vor.u32 %v4037_v4, %v3426_v2  ;;  %v3282_v14 = vld [vmem:[#allocation6 + $0x488] sm:$0xf]  ;;  %v4033_v18 = vld [vmem:[#allocation6 + $0x594] sm:$0xf0]  ;;  %v3855_v7 = vld [vmem:[#allocation6 + $0xc] sm:$0xf] }
  0x84   :  { %1477 = vmatpush.bf16.msrb.mxu0 %v2787_v32  ;;  %1491 = vmatpush.bf16.msrb.mxu1 %v2915_v33  ;;  %v3090_v32 = vld [vmem:[#allocation6 + $0x308] sm:$0xf]  ;;  %v3953_v33 = vld [vmem:[#allocation6 + $0x314] sm:$0xf0] }
  0x85   :  { %1505 = vmatpush.bf16.msrb.mxu2 %v3043_v34  ;;  %v3330_v34 = vld [vmem:[#allocation6 + $0x4e8] sm:$0xf]  ;;  %v3997_v28 = vld [vmem:[#allocation6 + $0x474] sm:$0xf0] }
  0x86   :  { %1519 = vmatpush.bf16.msrb.mxu3 %v3171_v40  ;;  %v4045_v40 = vld [vmem:[#allocation6 + $0x5f4] sm:$0xf0]  ;;  %v3410_v16 = vld [vmem:[#allocation6 + $0x588] sm:$0xf] }
  0x87   :  { %v3459_v49 = vor.u32 %v4045_v40, %v3458_v37  ;;  %v3266_v27 = vld [vmem:[#allocation6 + $0x468] sm:$0xf]  ;;  %v4029_v31 = vld [vmem:[#allocation6 + $0x574] sm:$0xf0] }
  0x88   :  { %1478 = vmatpush.bf16.msrb.mxu0 %v2771_v46  ;;  %1492 = vmatpush.bf16.msrb.mxu1 %v2899_v47  ;;  %v2948_v46 = vld [vmem:[#allocation6 + $0x1f8] sm:$0xf0]  ;;  %v3091_v47 = vor.u32 %v3953_v33, %v3090_v32  ;;  %v3394_v29 = vld [vmem:[#allocation6 + $0x568] sm:$0xf]  ;;  %v3867_v32 = vld [vmem:[#allocation6 + $0x6c] sm:$0xf]  ;;  %v3267_v37 = vor.u32 %v3997_v28, %v3266_v27 }
  0x89   :  { %1506 = vmatpush.bf16.msrb.mxu2 %v3027_v48  ;;  %v3331_v48 = vor.u32 %v4013_v36, %v3330_v34  ;;  %v2951_v54 = vor.u32 %v3915_v45, %v2948_v46  ;;  %v2756_v33 = vld [vmem:[#allocation6 + $0x78] sm:$0xf0]  ;;  %v3899_v34 = vld [vmem:[#allocation6 + $0x16c] sm:$0xf]  ;;  %v3250_v41 = vld [vmem:[#allocation6 + $0x448] sm:$0xf] }
  0x8a   :  { %1520 = vmatpush.bf16.msrb.mxu3 %v3155_v52  ;;  %v4009_v52 = vld [vmem:[#allocation6 + $0x4d4] sm:$0xf0]  ;;  %v2884_v36 = vld [vmem:[#allocation6 + $0x178] sm:$0xf0]  ;;  %v2759_v40 = vor.u32 %v3867_v32, %v2756_v33  ;;  %v3863_v46 = vld [vmem:[#allocation6 + $0x4c] sm:$0xf] }
  0x8b   :  { %v3993_v42 = vld [vmem:[#allocation6 + $0x454] sm:$0xf0]  ;;  %v3234_v53 = vld [vmem:[#allocation6 + $0x428] sm:$0xf]  ;;  %v3188_v33 = vld [vmem:[#allocation6 + $0x3d8] sm:$0xf0] }
  0x8c   :  { %1479 = vmatpush.bf16.msrb.mxu0 %v2755_v59  ;;  %1493 = vmatpush.bf16.msrb.mxu1 %v2883_v60  ;;  %v3911_v59 = vld [vmem:[#allocation6 + $0x1cc] sm:$0xf]  ;;  %v2932_v60 = vld [vmem:[#allocation6 + $0x1d8] sm:$0xf0]  ;;  %v4025_v45 = vld [vmem:[#allocation6 + $0x554] sm:$0xf0] }
  0x8d   :  { %1507 = vmatpush.bf16.msrb.mxu2 %v3011_v61  ;;  %v3315_v61 = vor.u32 %v4009_v52, %v3314_v51  ;;  %v2935_v3 = vor.u32 %v3911_v59, %v2932_v60  ;;  %v3362_v55 = vld [vmem:[#allocation6 + $0x528] sm:$0xf]  ;;  %v4021_v57 = vld [vmem:[#allocation6 + $0x534] sm:$0xf0]  ;;  %v3859_v59 = vld [vmem:[#allocation6 + $0x2c] sm:$0xf] }
  0x8e   :  { %1521 = vmatpush.bf16.msrb.mxu3 %v3139_v1  ;;  %v4005_v1 = vld [vmem:[#allocation6 + $0x4b4] sm:$0xf0]  ;;  %v2724_v60 = vld [vmem:[#allocation6 + $0x38] sm:$0xf0]  ;;  %v3363_v2 = vor.u32 %v4021_v57, %v3362_v55  ;;  %v3346_v4 = vld [vmem:[#allocation6 + $0x508] sm:$0xf] }
  0x8f   :  { %v4017_v6 = vld [vmem:[#allocation6 + $0x514] sm:$0xf0]  ;;  %v3935_v55 = vld [vmem:[#allocation6 + $0x28c] sm:$0xf] }
  0x90   :  { %1480 = vmatpush.bf16.msrb.mxu0 %v2739_v8  ;;  %1494 = vmatpush.bf16.msrb.mxu1 %v2867_v9  ;;  %v3907_v8 = vld [vmem:[#allocation6 + $0x1ac] sm:$0xf]  ;;  %v2916_v9 = vld [vmem:[#allocation6 + $0x1b8] sm:$0xf0] }
  0x91   :  { %1508 = vmatpush.bf16.msrb.mxu2 %v2995_v10  ;;  %v3299_v10 = vor.u32 %v4005_v1, %v3298_v0  ;;  %v2919_v17 = vor.u32 %v3907_v8, %v2916_v9  ;;  %v3218_v0 = vld [vmem:[#allocation6 + $0x408] sm:$0xf]  ;;  %v3985_v1 = vld [vmem:[#allocation6 + $0x414] sm:$0xf0]  ;;  %v2708_v9 = vld [vmem:[#allocation6 + $0x18] sm:$0xf0] }
  0x92   :  { %1522 = vmatpush.bf16.msrb.mxu3 %v3123_v15  ;;  %v4001_v15 = vld [vmem:[#allocation6 + $0x494] sm:$0xf0]  ;;  %v3967_v57 = vld [vmem:[#allocation6 + $0x38c] sm:$0xf] }
  0x93   :  { %v3283_v24 = vor.u32 %v4001_v15, %v3282_v14  ;;  %v3076_v14 = vld [vmem:[#allocation6 + $0x2f8] sm:$0xf0]  ;;  %v3979_v15 = vld [vmem:[#allocation6 + $0x3ec] sm:$0xf] }
  0x94   :  { %1481 = vmatpush.bf16.msrb.mxu0 %v2723_v21  ;;  %1495 = vmatpush.bf16.msrb.mxu1 %v2851_v25  ;;  %v3903_v21 = vld [vmem:[#allocation6 + $0x18c] sm:$0xf]  ;;  %v3411_v25 = vor.u32 %v4033_v18, %v3410_v16  ;;  %v3219_v16 = vor.u32 %v3985_v1, %v3218_v0 }
  0x95   :  { %1509 = vmatpush.bf16.msrb.mxu2 %v2979_v26  ;;  %v2775_v26 = vor.u32 %v3871_v19, %v2772_v20  ;;  %v4011_v18 = vld [vmem:[#allocation6 + $0x4ec] sm:$0xf]  ;;  %v3332_v19 = vld [vmem:[#allocation6 + $0x4f8] sm:$0xf0]  ;;  %v3347_v20 = vor.u32 %v4017_v6, %v3346_v4 }
  0x96   :  { %1523 = vmatpush.bf16.msrb.mxu3 %v3107_v30  ;;  %v2903_v30 = vor.u32 %v3903_v21, %v2900_v22  ;;  %v2711_v21 = vor.u32 %v3855_v7, %v2708_v9  ;;  %v4043_v22 = vld [vmem:[#allocation6 + $0x5ec] sm:$0xf]  ;;  %v3335_v28 = vor.u32 %v4011_v18, %v3332_v19  ;;  %v3140_v7 = vld [vmem:[#allocation6 + $0x378] sm:$0xf0] }
  0x97   :  { %v3963_v4 = vld [vmem:[#allocation6 + $0x36c] sm:$0xf]  ;;  %v3268_v9 = vld [vmem:[#allocation6 + $0x478] sm:$0xf0] }
  0x98   :  { %1482 = vmatpush.bf16.msrb.mxu0 %v2707_v38  ;;  %1496 = vmatpush.bf16.msrb.mxu1 %v2835_v43  ;;  %v3395_v38 = vor.u32 %v4029_v31, %v3394_v29  ;;  %v3378_v43 = vld [vmem:[#allocation6 + $0x548] sm:$0xf]  ;;  %v3943_v29 = vld [vmem:[#allocation6 + $0x2cc] sm:$0xf] }
  0x99   :  { %1510 = vmatpush.bf16.msrb.mxu2 %v2963_v44  ;;  %v2887_v44 = vor.u32 %v3899_v34, %v2884_v36  ;;  %v3379_v51 = vor.u32 %v4025_v45, %v3378_v43  ;;  %v3975_v31 = vld [vmem:[#allocation6 + $0x3cc] sm:$0xf]  ;;  %v3316_v36 = vld [vmem:[#allocation6 + $0x4d8] sm:$0xf0] }
  0x9a   :  { %1524 = vmatpush.bf16.msrb.mxu3 %v3091_v47  ;;  %v2740_v47 = vld [vmem:[#allocation6 + $0x58] sm:$0xf0]  ;;  %v4007_v34 = vld [vmem:[#allocation6 + $0x4cc] sm:$0xf] }
  0x9b   :  { %1483 = vmatmul.bf16.vlgmr.msrb.gmra.mxu0 %v4371_v58  ;;  %1497 = vmatmul.bf16.vlgmr.msrb.gmra.mxu1 %v4374_v5  ;;  %v2743_v52 = vor.u32 %v3863_v46, %v2740_v47  ;;  %v3939_v43 = vld [vmem:[#allocation6 + $0x2ac] sm:$0xf]  ;;  %v3172_v47 = vld [vmem:[#allocation6 + $0x3b8] sm:$0xf0] }
  0x9c   :  { %1531 = vmatpush.bf16.msra.mxu0 %v3331_v48  ;;  %1545 = vmatpush.bf16.msra.mxu1 %v3459_v49  ;;  %v3895_v48 = vld [vmem:[#allocation6 + $0x14c] sm:$0xf]  ;;  %v2868_v49 = vld [vmem:[#allocation6 + $0x158] sm:$0xf0] }
  0x9d   :  { %1559 = vmatpush.bf16.msra.mxu2 %v2823_v50  ;;  %1525 = vmatmul.bf16.vlgmr.msrb.gmra.mxu3 %v4380_v23  ;;  %v3251_v50 = vor.u32 %v3993_v42, %v3250_v41  ;;  %v2871_v56 = vor.u32 %v3895_v48, %v2868_v49  ;;  %v3191_v41 = vor.u32 %v3975_v31, %v3188_v33  ;;  %v3971_v45 = vld [vmem:[#allocation6 + $0x3ac] sm:$0xf]  ;;  %v3300_v49 = vld [vmem:[#allocation6 + $0x4b8] sm:$0xf0] }
  0x9e   :  { %1573 = vmatpush.bf16.msra.mxu3 %v2951_v54  ;;  %1511 = vmatmul.bf16.vlgmr.msrb.gmra.mxu2 %v4376_v11  ;;  %v3989_v54 = vld [vmem:[#allocation6 + $0x434] sm:$0xf0]  ;;  %v3319_v42 = vor.u32 %v4007_v34, %v3316_v36  ;;  %v4003_v48 = vld [vmem:[#allocation6 + $0x4ac] sm:$0xf]  ;;  %v3108_v34 = vld [vmem:[#allocation6 + $0x338] sm:$0xf0] }
  0x9f   :  { %v3959_v18 = vld [vmem:[#allocation6 + $0x34c] sm:$0xf] }
  0xa0   :  { %1532 = vmatpush.bf16.msra.mxu0 %v3315_v61  ;;  %1546 = vmatpush.bf16.msra.mxu1 %v3443_v62  ;;  %v3891_v61 = vld [vmem:[#allocation6 + $0x12c] sm:$0xf]  ;;  %v2852_v62 = vld [vmem:[#allocation6 + $0x138] sm:$0xf0] }
  0xa1   :  { %1560 = vmatpush.bf16.msra.mxu2 %v2807_v63  ;;  %v3235_v63 = vor.u32 %v3989_v54, %v3234_v53  ;;  %v2855_v8 = vor.u32 %v3891_v61, %v2852_v62  ;;  %v3175_v53 = vor.u32 %v3971_v45, %v3172_v47  ;;  %v3303_v54 = vor.u32 %v4003_v48, %v3300_v49  ;;  %v3999_v61 = vld [vmem:[#allocation6 + $0x48c] sm:$0xf]  ;;  %v3284_v62 = vld [vmem:[#allocation6 + $0x498] sm:$0xf0] }
  0xa2   :  { %1574 = vmatpush.bf16.msra.mxu3 %v2935_v3  ;;  %v2727_v3 = vor.u32 %v3859_v59, %v2724_v60  ;;  %v3156_v60 = vld [vmem:[#allocation6 + $0x398] sm:$0xf0]  ;;  %v3287_v1 = vor.u32 %v3999_v61, %v3284_v62  ;;  %v3955_v31 = vld [vmem:[#allocation6 + $0x32c] sm:$0xf]  ;;  %v4052_v62 = vld [vmem:[#allocation8 + $0x30] sm:$0xff] }
  0xa3   :  { %v3987_v36 = vld [vmem:[#allocation6 + $0x42c] sm:$0xf]  ;;  %v2964_v45 = vld [vmem:[#allocation6 + $0x218] sm:$0xf0] }
  0xa4   :  { %1533 = vmatpush.bf16.msra.mxu0 %v3299_v10  ;;  %1547 = vmatpush.bf16.msra.mxu1 %v3427_v12  ;;  %v3887_v10 = vld [vmem:[#allocation6 + $0x10c] sm:$0xf]  ;;  %v2836_v12 = vld [vmem:[#allocation6 + $0x118] sm:$0xf0] }
  0xa5   :  { %1561 = vmatpush.bf16.msra.mxu2 %v2791_v13  ;;  %v3947_v13 = vld [vmem:[#allocation6 + $0x2ec] sm:$0xf]  ;;  %v3092_v49 = vld [vmem:[#allocation6 + $0x318] sm:$0xf0] }
  0xa6   :  { %1575 = vmatpush.bf16.msra.mxu3 %v2919_v17  ;;  %v3204_v17 = vld [vmem:[#allocation6 + $0x3f8] sm:$0xf0] }
  0xa7   :  { %v3207_v27 = vor.u32 %v3979_v15, %v3204_v17  ;;  %v2996_v17 = vld [vmem:[#allocation6 + $0x258] sm:$0xf0] }
  0xa8   :  { %1534 = vmatpush.bf16.msra.mxu0 %v3283_v24  ;;  %1548 = vmatpush.bf16.msra.mxu1 %v3411_v25  ;;  %v3460_v24 = vld [vmem:[#allocation6 + $0x5f8] sm:$0xf0]  ;;  %v2839_v25 = vor.u32 %v3887_v10, %v2836_v12  ;;  %v4027_v10 = vld [vmem:[#allocation6 + $0x56c] sm:$0xf] }
  0xa9   :  { %1562 = vmatpush.bf16.msra.mxu2 %v2775_v26  ;;  %v3079_v26 = vor.u32 %v3947_v13, %v3076_v14  ;;  %v3463_v32 = vor.u32 %v4043_v22, %v3460_v24  ;;  %v3396_v12 = vld [vmem:[#allocation6 + $0x578] sm:$0xf0]  ;;  %v3143_v14 = vor.u32 %v3963_v4, %v3140_v7  ;;  %v4023_v24 = vld [vmem:[#allocation6 + $0x54c] sm:$0xf]  ;;  %v4050_v4 = vld [vmem:[#allocation8 + $0x20] sm:$0xff] }
  0xaa   :  { %1576 = vmatpush.bf16.msra.mxu3 %v2903_v30  ;;  %v3060_v30 = vld [vmem:[#allocation6 + $0x2d8] sm:$0xf0]  ;;  %v3399_v19 = vor.u32 %v4027_v10, %v3396_v12 }
  0xab   :  { %v3252_v22 = vld [vmem:[#allocation6 + $0x458] sm:$0xf0] }
  0xac   :  { %1535 = vmatpush.bf16.msra.mxu0 %v3267_v37  ;;  %1549 = vmatpush.bf16.msra.mxu1 %v3395_v38  ;;  %v4039_v37 = vld [vmem:[#allocation6 + $0x5cc] sm:$0xf]  ;;  %v3444_v38 = vld [vmem:[#allocation6 + $0x5d8] sm:$0xf0] }
  0xad   :  { %1563 = vmatpush.bf16.msra.mxu2 %v2759_v40  ;;  %v3063_v40 = vor.u32 %v3943_v29, %v3060_v30  ;;  %v3447_v46 = vor.u32 %v4039_v37, %v3444_v38  ;;  %v3923_v29 = vld [vmem:[#allocation6 + $0x22c] sm:$0xf]  ;;  %v2980_v30 = vld [vmem:[#allocation6 + $0x238] sm:$0xf0] }
  0xae   :  { %1577 = vmatpush.bf16.msra.mxu3 %v2887_v44  ;;  %v3044_v44 = vld [vmem:[#allocation6 + $0x2b8] sm:$0xf0]  ;;  %v4019_v38 = vld [vmem:[#allocation6 + $0x52c] sm:$0xf] }
  0xaf   :  { %v3236_v37 = vld [vmem:[#allocation6 + $0x438] sm:$0xf0] }
  0xb0   :  { %1536 = vmatpush.bf16.msra.mxu0 %v3251_v50  ;;  %1550 = vmatpush.bf16.msra.mxu1 %v3379_v51  ;;  %v4035_v50 = vld [vmem:[#allocation6 + $0x5ac] sm:$0xf]  ;;  %v3428_v51 = vld [vmem:[#allocation6 + $0x5b8] sm:$0xf0] }
  0xb1   :  { %1564 = vmatpush.bf16.msra.mxu2 %v2743_v52  ;;  %v3047_v52 = vor.u32 %v3939_v43, %v3044_v44  ;;  %v3431_v59 = vor.u32 %v4035_v50, %v3428_v51  ;;  %v3239_v43 = vor.u32 %v3987_v36, %v3236_v37  ;;  %v3919_v44 = vld [vmem:[#allocation6 + $0x20c] sm:$0xf]  ;;  %v3220_v51 = vld [vmem:[#allocation6 + $0x418] sm:$0xf0]  ;;  %v4068_v36 = vld [vmem:[#allocation8 + $0xb0] sm:$0xff] }
  0xb2   :  { %1578 = vmatpush.bf16.msra.mxu3 %v2871_v56  ;;  %v3028_v56 = vld [vmem:[#allocation6 + $0x298] sm:$0xf0]  ;;  %v3983_v50 = vld [vmem:[#allocation6 + $0x40c] sm:$0xf] }
  0xb3   :  { %v3031_v0 = vor.u32 %v3935_v55, %v3028_v56  ;;  %v3223_v56 = vor.u32 %v3983_v50, %v3220_v51 }
  0xb4   :  { %1537 = vmatpush.bf16.msra.mxu0 %v3235_v63  ;;  %1551 = vmatpush.bf16.msra.mxu1 %v3363_v2  ;;  %v4031_v63 = vld [vmem:[#allocation6 + $0x58c] sm:$0xf] }
  0xb5   :  { %1565 = vmatpush.bf16.msra.mxu2 %v2727_v3  ;;  %v3931_v2 = vld [vmem:[#allocation6 + $0x26c] sm:$0xf]  ;;  %v3012_v3 = vld [vmem:[#allocation6 + $0x278] sm:$0xf0] }
  0xb6   :  { %1579 = vmatpush.bf16.msra.mxu3 %v2855_v8  ;;  %v3995_v8 = vld [vmem:[#allocation6 + $0x46c] sm:$0xf]  ;;  %v3015_v13 = vor.u32 %v3931_v2, %v3012_v3 }
  0xb7   :  { %v3271_v15 = vor.u32 %v3995_v8, %v3268_v9  ;;  %v4057_v9 = vld [vmem:[#allocation8 + $0x58] sm:$0xff] }
  0xb8   :  { %1538 = vmatpush.bf16.msra.mxu0 %v3219_v16  ;;  %1552 = vmatpush.bf16.msra.mxu1 %v3347_v20  ;;  %v3927_v16 = vld [vmem:[#allocation6 + $0x24c] sm:$0xf]  ;;  %v3124_v20 = vld [vmem:[#allocation6 + $0x358] sm:$0xf0]  ;;  %v1330_v48 = vpop.f32.mrf.mxu1 }
  0xb9   :  { %1566 = vmatpush.bf16.msra.mxu2 %v2711_v21  ;;  %v3991_v21 = vld [vmem:[#allocation6 + $0x44c] sm:$0xf] }
  0xba   :  { %1580 = vmatpush.bf16.msra.mxu3 %v2839_v25  ;;  %v3380_v25 = vld [vmem:[#allocation6 + $0x558] sm:$0xf0] }
  0xbb   :  { %1539 = vmatmul.bf16.vlgmr.msra.gmra.mxu0 %v4383_v35  ;;  %1553 = vmatmul.bf16.vlgmr.msra.gmra.mxu1 %v4385_v39 }
  0xbc   :  { %1587 = vmatpush.bf16.msrb.mxu0 %v3079_v26  ;;  %1601 = vmatpush.bf16.msrb.mxu1 %v3207_v27  ;;  %v2999_v26 = vor.u32 %v3927_v16, %v2996_v17  ;;  %v3127_v27 = vor.u32 %v3959_v18, %v3124_v20  ;;  %v1316_v33 = vpop.f32.mrf.mxu0  ;;  %v4047_v18 = vld [vmem:[#allocation8 + $0x8] sm:$0xff] }
  0xbd   :  { %1615 = vmatpush.bf16.msrb.mxu2 %v3335_v28  ;;  %1581 = vmatmul.bf16.vlgmr.msra.gmra.mxu3 %v4374_v5  ;;  %v3159_v5 = vor.u32 %v3967_v57, %v3156_v60  ;;  %v3255_v28 = vor.u32 %v3991_v21, %v3252_v22  ;;  %v4061_v60 = vld [vmem:[#allocation8 + $0x78] sm:$0xff]  ;;  %v4055_v20 = vld [vmem:[#allocation8 + $0x48] sm:$0xff] }
  0xbe   :  { %1629 = vmatpush.bf16.msrb.mxu3 %v3463_v32  ;;  %1567 = vmatmul.bf16.vlgmr.msra.gmra.mxu2 %v4371_v58  ;;  %v3412_v58 = vld [vmem:[#allocation6 + $0x598] sm:$0xf0]  ;;  %v3383_v32 = vor.u32 %v4023_v24, %v3380_v25  ;;  %v4046_v24 = vld [vmem:[#allocation8] sm:$0xff] }
  0xbf   :  { %v3415_v6 = vor.u32 %v4031_v63, %v3412_v58  ;;  %v4060_v63 = vld [vmem:[#allocation8 + $0x70] sm:$0xff] }
  0xc0   :  { %1588 = vmatpush.bf16.msrb.mxu0 %v3063_v40  ;;  %1602 = vmatpush.bf16.msrb.mxu1 %v3191_v41  ;;  %v3364_v40 = vld [vmem:[#allocation6 + $0x538] sm:$0xf0]  ;;  %v2983_v41 = vor.u32 %v3923_v29, %v2980_v30  ;;  %v1332_v58 = vpop.f32.mrf.mxu1  ;;  %v1358_v2 = vpop.f32.mrf.mxu3 }
  0xc1   :  { %1616 = vmatpush.bf16.msrb.mxu2 %v3319_v42  ;;  %v3111_v42 = vor.u32 %v3955_v31, %v3108_v34  ;;  %v3367_v47 = vor.u32 %v4019_v38, %v3364_v40 }
  0xc2   :  { %1630 = vmatpush.bf16.msrb.mxu3 %v3447_v46  ;;  %v3951_v46 = vld [vmem:[#allocation6 + $0x30c] sm:$0xf] }
  0xc3   :  { %v3095_v55 = vor.u32 %v3951_v46, %v3092_v49  ;;  %v4066_v46 = vld [vmem:[#allocation8 + $0xa0] sm:$0xff] }
  0xc4   :  { %1589 = vmatpush.bf16.msrb.mxu0 %v3047_v52  ;;  %1603 = vmatpush.bf16.msrb.mxu1 %v3175_v53  ;;  %v4015_v52 = vld [vmem:[#allocation6 + $0x50c] sm:$0xf]  ;;  %v3348_v53 = vld [vmem:[#allocation6 + $0x518] sm:$0xf0]  ;;  %v1318_v61 = vpop.f32.mrf.mxu0 }
  0xc5   :  { %1617 = vmatpush.bf16.msrb.mxu2 %v3303_v54  ;;  %v2967_v54 = vor.u32 %v3919_v44, %v2964_v45  ;;  %v3351_v57 = vor.u32 %v4015_v52, %v3348_v53  ;;  %v1333_v7 = vadd.f32 %v1332_v58, %v1318_v61  ;;  %v4063_v61 = vld [vmem:[#allocation8 + $0x88] sm:$0xff] }
  0xc6   :  { %1631 = vmatpush.bf16.msrb.mxu3 %v3431_v59  ;;  %v4053_v59 = vld [vmem:[#allocation8 + $0x38] sm:$0xff] }
  0xc8   :  { %1590 = vmatpush.bf16.msrb.mxu0 %v3031_v0  ;;  %1604 = vmatpush.bf16.msrb.mxu1 %v3159_v5  ;;  %v1344_v0 = vpop.f32.mrf.mxu2  ;;  %v4051_v5 = vld [vmem:[#allocation8 + $0x28] sm:$0xff]  ;;  %v1360_v12 = vpop.f32.mrf.mxu3 }
  0xc9   :  { %1618 = vmatpush.bf16.msrb.mxu2 %v3287_v1  ;;  %v4059_v1 = vld [vmem:[#allocation8 + $0x68] sm:$0xff] }
  0xca   :  { %1632 = vmatpush.bf16.msrb.mxu3 %v3415_v6  ;;  %v1331_v6 = vadd.f32 %v1330_v48, %v1316_v33  ;;  %v4069_v33 = vld [vmem:[#allocation8 + $0xb8] sm:$0xff] }
  0xcc   :  { %1591 = vmatpush.bf16.msrb.mxu0 %v3015_v13  ;;  %1605 = vmatpush.bf16.msrb.mxu1 %v3143_v14  ;;  %v1345_v10 = vadd.f32 %v1344_v0, %v1331_v6  ;;  %v4048_v13 = vld [vmem:[#allocation8 + $0x10] sm:$0xff]  ;;  %v4077_v0 = vld [vmem:[#allocation8 + $0xf8] sm:$0xff] }
  0xcd   :  { %1619 = vmatpush.bf16.msrb.mxu2 %v3271_v15  ;;  %v4056_v14 = vld [vmem:[#allocation8 + $0x50] sm:$0xff] }
  0xce   :  { %1633 = vmatpush.bf16.msrb.mxu3 %v3399_v19  ;;  %v1359_v16 = vadd.f32 %v1358_v2, %v1345_v10 }
  0xd0   :  { %1592 = vmatpush.bf16.msrb.mxu0 %v2999_v26  ;;  %1606 = vmatpush.bf16.msrb.mxu1 %v3127_v27 }
  0xd1   :  { %1620 = vmatpush.bf16.msrb.mxu2 %v3255_v28  ;;  %v4054_v28 = vld [vmem:[#allocation8 + $0x40] sm:$0xff] }
  0xd2   :  { %1634 = vmatpush.bf16.msrb.mxu3 %v3383_v32 }
  0xd4   :  { %1593 = vmatpush.bf16.msrb.mxu0 %v2983_v41  ;;  %1607 = vmatpush.bf16.msrb.mxu1 %v3111_v42  ;;  %v4067_v41 = vld [vmem:[#allocation8 + $0xa8] sm:$0xff] }
  0xd5   :  { %1621 = vmatpush.bf16.msrb.mxu2 %v3239_v43 }
  0xd6   :  { %1635 = vmatpush.bf16.msrb.mxu3 %v3367_v47 }
  0xd8   :  { %1594 = vmatpush.bf16.msrb.mxu0 %v2967_v54  ;;  %1608 = vmatpush.bf16.msrb.mxu1 %v3095_v55  ;;  %v1372_v3 = vpop.f32.mrf.mxu0  ;;  %v1386_v8 = vpop.f32.mrf.mxu1 }
  0xd9   :  { %1622 = vmatpush.bf16.msrb.mxu2 %v3223_v56  ;;  %v1373_v22 = vadd.f32 %v1372_v3, %v1359_v16 }
  0xda   :  { %1636 = vmatpush.bf16.msrb.mxu3 %v3351_v57 }
  0xdb   :  { %1595 = vmatmul.bf16.vlgmr.msrb.gmra.mxu0 %v4376_v11  ;;  %1609 = vmatmul.bf16.vlgmr.msrb.gmra.mxu1 %v4380_v23  ;;  %v4058_v11 = vld [vmem:[#allocation8 + $0x60] sm:$0xff]  ;;  %v1346_v23 = vpop.f32.mrf.mxu2  ;;  %v4409_v29 = vadd.f32 %v1386_v8, %v1373_v22 }
  0xdc   :  { %1930 = vmatpush.bf16.msra.mxu0 %v4053_v59  ;;  %1944 = vmatpush.bf16.msra.mxu1 %v4061_v60  ;;  %v4065_v59 = vld [vmem:[#allocation8 + $0x98] sm:$0xff]  ;;  %v4064_v60 = vld [vmem:[#allocation8 + $0x90] sm:$0xff]  ;;  %v4074_v8 = vld [vmem:[#allocation8 + $0xe0] sm:$0xff] }
  0xdd   :  { %1623 = vmatmul.bf16.vlgmr.msrb.gmra.mxu2 %v4383_v35  ;;  %1637 = vmatmul.bf16.vlgmr.msrb.gmra.mxu3 %v4385_v39  ;;  %v4049_v35 = vld [vmem:[#allocation8 + $0x18] sm:$0xff]  ;;  %v1347_v39 = vadd.f32 %v1346_v23, %v1333_v7 }
  0xde   :  { %1958 = vmatpush.bf16.msra.mxu2 %v4069_v33  ;;  %1972 = vmatpush.bf16.msra.mxu3 %v4077_v0 }
  0xdf   :  { %v1361_v17 = vadd.f32 %v1360_v12, %v1347_v39 }
  0xe0   :  { %1931 = vmatpush.bf16.msra.mxu0 %v4052_v62  ;;  %1945 = vmatpush.bf16.msra.mxu1 %v4060_v63  ;;  %v1374_v15 = vpop.f32.mrf.mxu0  ;;  %v1388_v21 = vpop.f32.mrf.mxu1  ;;  %v4062_v63 = vld [vmem:[#allocation8 + $0x80] sm:$0xff] }
  0xe1   :  { %v1375_v19 = vadd.f32 %v1374_v15, %v1361_v17  ;;  %v1414_v27 = vpop.f32.mrf.mxu3  ;;  %v4072_v17 = vld [vmem:[#allocation8 + $0xd0] sm:$0xff] }
  0xe2   :  { %1959 = vmatpush.bf16.msra.mxu2 %v4068_v36 }
  0xe3   :  { %v1400_v25 = vpop.f32.mrf.mxu2  ;;  %v4407_v26 = vadd.f32 %v1388_v21, %v1375_v19 }
  0xe4   :  { %1932 = vmatpush.bf16.msra.mxu0 %v4051_v5  ;;  %1946 = vmatpush.bf16.msra.mxu1 %v4059_v1  ;;  %v1415_v38 = vadd.f32 %v1414_v27, %v1400_v25  ;;  %v4076_v5 = vld [vmem:[#allocation8 + $0xf0] sm:$0xff]  ;;  %v4070_v27 = vld [vmem:[#allocation8 + $0xc0] sm:$0xff] }
  0xe5   :  { %v1670_v30 = vpack.c.bf16 %v4407_v26, %v4409_v29  ;;  %1973 = vmatpush.bf16.msra.mxu3 %v4076_v5  ;;  %v4107_v5 = vld [vmem:[#allocation9 + $0xec] sm:$0xf] }
  0xe6   :  { %1960 = vmatpush.bf16.msra.mxu2 %v4067_v41 }
  0xe8   :  { %1933 = vmatpush.bf16.msra.mxu0 %v4050_v4  ;;  %1947 = vmatpush.bf16.msra.mxu1 %v4058_v11  ;;  %v4075_v4 = vld [vmem:[#allocation8 + $0xe8] sm:$0xff] }
  0xe9   :  { %v1416_v32 = vpop.f32.mrf.mxu3  ;;  %1974 = vmatpush.bf16.msra.mxu3 %v4075_v4  ;;  %v4104_v4 = vld [vmem:[#allocation9 + $0xcc] sm:$0xf0] }
  0xea   :  { %1961 = vmatpush.bf16.msra.mxu2 %v4066_v46 }
  0xeb   :  { %v1402_v31 = vpop.f32.mrf.mxu2 }
  0xec   :  { %1934 = vmatpush.bf16.msra.mxu0 %v4049_v35  ;;  %1948 = vmatpush.bf16.msra.mxu1 %v4057_v9  ;;  %v1417_v43 = vadd.f32 %v1416_v32, %v1402_v31 }
  0xed   :  { %1975 = vmatpush.bf16.msra.mxu3 %v4074_v8  ;;  %v3698_v8 = vld [vmem:[#allocation9 + $0xc8] sm:$0xf] }
  0xee   :  { %1962 = vmatpush.bf16.msra.mxu2 %v4065_v59  ;;  %v4106_v59 = vld [vmem:[#allocation9 + $0xe4] sm:$0xf] }
  0xf0   :  { %1935 = vmatpush.bf16.msra.mxu0 %v4048_v13  ;;  %1949 = vmatpush.bf16.msra.mxu1 %v4056_v14  ;;  %v4073_v13 = vld [vmem:[#allocation8 + $0xd8] sm:$0xff] }
  0xf1   :  { %1976 = vmatpush.bf16.msra.mxu3 %v4073_v13  ;;  %v4100_v13 = vld [vmem:[#allocation9 + $0xac] sm:$0xf0] }
  0xf2   :  { %1963 = vmatpush.bf16.msra.mxu2 %v4064_v60 }
  0xf4   :  { %1936 = vmatpush.bf16.msra.mxu0 %v4047_v18  ;;  %1950 = vmatpush.bf16.msra.mxu1 %v4055_v20 }
  0xf5   :  { %1977 = vmatpush.bf16.msra.mxu3 %v4072_v17  ;;  %v3682_v17 = vld [vmem:[#allocation9 + $0xa8] sm:$0xf] }
  0xf6   :  { %1964 = vmatpush.bf16.msra.mxu2 %v4063_v61  ;;  %v3708_v61 = vld [vmem:[#allocation9 + $0xf0] sm:$0xf0] }
  0xf8   :  { %1937 = vmatpush.bf16.msra.mxu0 %v4046_v24  ;;  %1951 = vmatpush.bf16.msra.mxu1 %v4054_v28  ;;  %v1428_v34 = vpop.f32.mrf.mxu0  ;;  %v1442_v37 = vpop.f32.mrf.mxu1  ;;  %v4071_v24 = vld [vmem:[#allocation8 + $0xc8] sm:$0xff] }
  0xf9   :  { %v1429_v40 = vadd.f32 %v1428_v34, %v1415_v38  ;;  %1978 = vmatpush.bf16.msra.mxu3 %v4071_v24  ;;  %v3684_v24 = vld [vmem:[#allocation9 + $0xb8] sm:$0xf0] }
  0xfa   :  { %1965 = vmatpush.bf16.msra.mxu2 %v4062_v63  ;;  %v4109_v63 = vld [vmem:[#allocation9 + $0xf4] sm:$0xf0] }
  0xfb   :  { %1938 = vmatmul.bf16.vlgmr.msra.gmra.mxu0 %v1670_v30  ;;  %v1443_v47 = vadd.f32 %v1442_v37, %v1429_v40 }
  0xfd   :  { %1979 = vmatpush.bf16.msra.mxu3 %v4070_v27 }
 0x100   :  { %v1430_v44 = vpop.f32.mrf.mxu0  ;;  %v1470_v45 = vpop.f32.mrf.mxu3 }
 0x101   :  { %v1456_v42 = vpop.f32.mrf.mxu2  ;;  %v1431_v48 = vadd.f32 %v1430_v44, %v1417_v43  ;;  %v1444_v49 = vpop.f32.mrf.mxu1 }
 0x102   :  { %v1457_v50 = vadd.f32 %v1456_v42, %v1443_v47 }
 0x103   :  { %v1445_v51 = vadd.f32 %v1444_v49, %v1431_v48 }
 0x104   :  { %v4413_v55 = vadd.f32 %v1470_v45, %v1457_v50 }
 0x108   :  { %v1472_v54 = vpop.f32.mrf.mxu3 }
 0x109   :  { %v1458_v52 = vpop.f32.mrf.mxu2 }
 0x10a   :  { %v1459_v53 = vadd.f32 %v1458_v52, %v1445_v51 }
 0x10c   :  { %v4415_v56 = vadd.f32 %v1472_v54, %v1459_v53  ;;  %v3706_v54 = vld [vmem:[#allocation9 + $0xe0] sm:$0xf] }
 0x10e   :  { %v1671_v57 = vpack.c.bf16 %v4415_v56, %v4413_v55 }
 0x110   :  { %1952 = vmatmul.bf16.vlgmr.msra.gmra.mxu1 %v1671_v57  ;;  %v4108_v57 = vld [vmem:[#allocation9 + $0xec] sm:$0xf0] }
 0x111   :  { %v3707_v60 = vor.u32 %v4108_v57, %v3706_v54  ;;  %v4091_v57 = vld [vmem:[#allocation9 + $0x6c] sm:$0xf] }
 0x113   :  { %2181 = vmatpush.bf16.msrb.mxu0 %v3707_v60 }
 0x118   :  { %v1484_v62 = vpop.f32.mrf.mxu0  ;;  %v1498_v58 = vpop.f32.mrf.mxu1 }
 0x119   :  { %v1499_v6 = vadd.f32 %v1498_v58, %v1484_v62  ;;  %v3714_v62 = vld [vmem:[#allocation9 + $0xe8] sm:$0xf]  ;;  %v3711_v58 = vor.u32 %v4106_v59, %v3708_v61  ;;  %v3652_v59 = vld [vmem:[#allocation9 + $0x78] sm:$0xf0]  ;;  %v3626_v61 = vld [vmem:[#allocation9 + $0x40] sm:$0xf] }
 0x11a   :  { %v3715_v0 = vor.u32 %v4109_v63, %v3714_v62  ;;  %v3655_v60 = vor.u32 %v4091_v57, %v3652_v59  ;;  %v4088_v62 = vld [vmem:[#allocation9 + $0x4c] sm:$0xf0]  ;;  %v4086_v63 = vld [vmem:[#allocation9 + $0x44] sm:$0xf] }
 0x11b   :  { %2195 = vmatpush.bf16.msrb.mxu1 %v3711_v58  ;;  %v3627_v58 = vor.u32 %v4088_v62, %v3626_v61 }
 0x11c   :  { %2209 = vmatpush.bf16.msrb.mxu2 %v3715_v0  ;;  %v3628_v0 = vld [vmem:[#allocation9 + $0x50] sm:$0xf0] }
 0x120   :  { %v1486_v1 = vpop.f32.mrf.mxu0  ;;  %v1500_v3 = vpop.f32.mrf.mxu1 }
 0x121   :  { %v1512_v2 = vpop.f32.mrf.mxu2  ;;  %v1526_v11 = vpop.f32.mrf.mxu3  ;;  %v1501_v23 = vadd.f32 %v1500_v3, %v1486_v1  ;;  %v3716_v1 = vld [vmem:[#allocation9 + $0xf8] sm:$0xf0] }
 0x122   :  { %v1513_v7 = vadd.f32 %v1512_v2, %v1499_v6  ;;  %v3690_v2 = vld [vmem:[#allocation9 + $0xc0] sm:$0xf]  ;;  %v3719_v3 = vor.u32 %v4107_v5, %v3716_v1  ;;  %v3692_v6 = vld [vmem:[#allocation9 + $0xd0] sm:$0xf0]  ;;  %v3634_v5 = vld [vmem:[#allocation9 + $0x48] sm:$0xf] }
 0x123   :  { %v4089_v1 = vld [vmem:[#allocation9 + $0x54] sm:$0xf0] }
 0x124   :  { %v1527_v39 = vadd.f32 %v1526_v11, %v1513_v7  ;;  %v4102_v11 = vld [vmem:[#allocation9 + $0xc4] sm:$0xf]  ;;  %v3691_v7 = vor.u32 %v4104_v4, %v3690_v2  ;;  %2223 = vmatpush.bf16.msrb.mxu3 %v3719_v3  ;;  %v3631_v2 = vor.u32 %v4086_v63, %v3628_v0  ;;  %v3635_v3 = vor.u32 %v4089_v1, %v3634_v5  ;;  %v4087_v4 = vld [vmem:[#allocation9 + $0x4c] sm:$0xf] }
 0x125   :  { %v2254_v0 = vmul.f32 0.8, %v4413_v55 }
 0x126   :  { %2182 = vmatpush.bf16.msrb.mxu0 %v3691_v7  ;;  %v3610_v7 = vld [vmem:[#allocation9 + $0x20] sm:$0xf] }
 0x129   :  { %v1514_v9 = vpop.f32.mrf.mxu2  ;;  %v1528_v14 = vpop.f32.mrf.mxu3 }
 0x12a   :  { %v1515_v12 = vadd.f32 %v1514_v9, %v1501_v23  ;;  %v3695_v23 = vor.u32 %v4102_v11, %v3692_v6  ;;  %v4103_v9 = vld [vmem:[#allocation9 + $0xcc] sm:$0xf]  ;;  %v3636_v11 = vld [vmem:[#allocation9 + $0x58] sm:$0xf0] }
 0x12b   :  { %v3639_v6 = vor.u32 %v4087_v4, %v3636_v11 }
 0x12c   :  { %v1529_v16 = vadd.f32 %v1528_v14, %v1515_v12  ;;  %v3674_v12 = vld [vmem:[#allocation9 + $0xa0] sm:$0xf]  ;;  %2196 = vmatpush.bf16.msrb.mxu1 %v3695_v23  ;;  %v4084_v23 = vld [vmem:[#allocation9 + $0x2c] sm:$0xf0] }
 0x138   :  { %v1540_v35 = vpop.f32.mrf.mxu0  ;;  %v1554_v10 = vpop.f32.mrf.mxu1 }
 0x139   :  { %v1541_v15 = vadd.f32 %v1540_v35, %v1527_v39  ;;  %v4105_v35 = vld [vmem:[#allocation9 + $0xd4] sm:$0xf0]  ;;  %v3700_v39 = vld [vmem:[#allocation9 + $0xd8] sm:$0xf0] }
 0x13a   :  { %v3703_v14 = vor.u32 %v4103_v9, %v3700_v39  ;;  %v3612_v9 = vld [vmem:[#allocation9 + $0x30] sm:$0xf0]  ;;  %v4085_v39 = vld [vmem:[#allocation9 + $0x34] sm:$0xf0] }
 0x13b   :  { %v4419_v21 = vadd.f32 %v1554_v10, %v1541_v15  ;;  %v3699_v10 = vor.u32 %v4105_v35, %v3698_v8  ;;  %v4098_v15 = vld [vmem:[#allocation9 + $0xa4] sm:$0xf]  ;;  %v3611_v35 = vor.u32 %v4084_v23, %v3610_v7 }
 0x13c   :  { %2224 = vmatpush.bf16.msrb.mxu3 %v3703_v14  ;;  %v4082_v8 = vld [vmem:[#allocation9 + $0x24] sm:$0xf]  ;;  %v4083_v14 = vld [vmem:[#allocation9 + $0x2c] sm:$0xf] }
 0x13d   :  { %2210 = vmatpush.bf16.msrb.mxu2 %v3699_v10  ;;  %v3618_v10 = vld [vmem:[#allocation9 + $0x28] sm:$0xf]  ;;  %v2255_v23 = vmul.f32 0.8, %v4419_v21 }
 0x140   :  { %v1542_v18 = vpop.f32.mrf.mxu0  ;;  %v1556_v20 = vpop.f32.mrf.mxu1 }
 0x141   :  { %v1543_v19 = vadd.f32 %v1542_v18, %v1529_v16  ;;  %v1568_v28 = vpop.f32.mrf.mxu2  ;;  %v1582_v30 = vpop.f32.mrf.mxu3  ;;  %v3676_v16 = vld [vmem:[#allocation9 + $0xb0] sm:$0xf0]  ;;  %v3675_v18 = vor.u32 %v4100_v13, %v3674_v12  ;;  %v3615_v12 = vor.u32 %v4082_v8, %v3612_v9  ;;  %v3619_v13 = vor.u32 %v4085_v39, %v3618_v10 }
 0x142   :  { %v1583_v36 = vadd.f32 %v1582_v30, %v1568_v28  ;;  %v3658_v28 = vld [vmem:[#allocation9 + $0x80] sm:$0xf]  ;;  %v4096_v30 = vld [vmem:[#allocation9 + $0x8c] sm:$0xf0] }
 0x143   :  { %v4421_v22 = vadd.f32 %v1556_v20, %v1543_v19  ;;  %v4101_v19 = vld [vmem:[#allocation9 + $0xb4] sm:$0xf0]  ;;  %v4099_v20 = vld [vmem:[#allocation9 + $0xac] sm:$0xf]  ;;  %2183 = vmatpush.bf16.msrb.mxu0 %v3675_v18  ;;  %v4080_v18 = vld [vmem:[#allocation9 + $0xc] sm:$0xf0] }
 0x144   :  { %v3683_v27 = vor.u32 %v4101_v19, %v3682_v17  ;;  %v3594_v17 = vld [vmem:[#allocation9] sm:$0xf]  ;;  %v4078_v19 = vld [vmem:[#allocation9 + $0x4] sm:$0xf] }
 0x145   :  { %v1672_v25 = vpack.c.bf16 %v4421_v22, %v4419_v21 }
 0x146   :  { %2211 = vmatpush.bf16.msrb.mxu2 %v3683_v27  ;;  %v4081_v27 = vld [vmem:[#allocation9 + $0x14] sm:$0xf0] }
 0x147   :  { %1966 = vmatmul.bf16.vlgmr.msra.gmra.mxu2 %v1672_v25  ;;  %v3679_v25 = vor.u32 %v4098_v15, %v3676_v16  ;;  %v3620_v15 = vld [vmem:[#allocation9 + $0x38] sm:$0xf0] }
 0x148   :  { %v3623_v16 = vor.u32 %v4083_v14, %v3620_v15  ;;  %v2258_v15 = vmul.f32 0.8, %v4415_v56 }
 0x149   :  { %v1570_v31 = vpop.f32.mrf.mxu2  ;;  %v1584_v32 = vpop.f32.mrf.mxu3  ;;  %2197 = vmatpush.bf16.msrb.mxu1 %v3679_v25  ;;  %v3602_v25 = vld [vmem:[#allocation9 + $0x8] sm:$0xf] }
 0x14a   :  { %v1585_v38 = vadd.f32 %v1584_v32, %v1570_v31  ;;  %v4094_v31 = vld [vmem:[#allocation9 + $0x84] sm:$0xf]  ;;  %v3687_v32 = vor.u32 %v4099_v20, %v3684_v24  ;;  %v3595_v20 = vor.u32 %v4080_v18, %v3594_v17  ;;  %v3596_v24 = vld [vmem:[#allocation9 + $0x10] sm:$0xf0] }
 0x14c   :  { %2225 = vmatpush.bf16.msrb.mxu3 %v3687_v32  ;;  %v3604_v32 = vld [vmem:[#allocation9 + $0x18] sm:$0xf0] }
 0x158   :  { %v1596_v33 = vpop.f32.mrf.mxu0  ;;  %v1610_v34 = vpop.f32.mrf.mxu1 }
 0x159   :  { %v1597_v40 = vadd.f32 %v1596_v33, %v1583_v36  ;;  %v3660_v33 = vld [vmem:[#allocation9 + $0x90] sm:$0xf0]  ;;  %v4097_v36 = vld [vmem:[#allocation9 + $0x94] sm:$0xf0] }
 0x15b   :  { %v1611_v44 = vadd.f32 %v1610_v34, %v1597_v40  ;;  %v3666_v34 = vld [vmem:[#allocation9 + $0x88] sm:$0xf]  ;;  %v3659_v40 = vor.u32 %v4096_v30, %v3658_v28  ;;  %v3599_v28 = vor.u32 %v4078_v19, %v3596_v24  ;;  %v3603_v30 = vor.u32 %v4081_v27, %v3602_v25 }
 0x15d   :  { %2184 = vmatpush.bf16.msrb.mxu0 %v3659_v40 }
 0x160   :  { %v1624_v37 = vpop.f32.mrf.mxu2  ;;  %v1638_v41 = vpop.f32.mrf.mxu3 }
 0x161   :  { %v1598_v42 = vpop.f32.mrf.mxu0  ;;  %v1612_v45 = vpop.f32.mrf.mxu1  ;;  %v1625_v46 = vadd.f32 %v1624_v37, %v1611_v44  ;;  %v4095_v37 = vld [vmem:[#allocation9 + $0x8c] sm:$0xf]  ;;  %v3642_v44 = vld [vmem:[#allocation9 + $0x60] sm:$0xf] }
 0x162   :  { %v1599_v43 = vadd.f32 %v1598_v42, %v1585_v38  ;;  %v3668_v38 = vld [vmem:[#allocation9 + $0x98] sm:$0xf0]  ;;  %v3667_v42 = vor.u32 %v4097_v36, %v3666_v34 }
 0x163   :  { %v4425_v51 = vadd.f32 %v1638_v41, %v1625_v46  ;;  %v3663_v41 = vor.u32 %v4094_v31, %v3660_v33  ;;  %v4090_v46 = vld [vmem:[#allocation9 + $0x64] sm:$0xf]  ;;  %v4079_v31 = vld [vmem:[#allocation9 + $0xc] sm:$0xf] }
 0x164   :  { %v1613_v47 = vadd.f32 %v1612_v45, %v1599_v43  ;;  %v3671_v43 = vor.u32 %v4095_v37, %v3668_v38  ;;  %2212 = vmatpush.bf16.msrb.mxu2 %v3667_v42  ;;  %v4092_v45 = vld [vmem:[#allocation9 + $0x6c] sm:$0xf0]  ;;  %v3607_v33 = vor.u32 %v4079_v31, %v3604_v32 }
 0x165   :  { %2198 = vmatpush.bf16.msrb.mxu1 %v3663_v41  ;;  %v2256_v8 = vmul.f32 0.8, %v4425_v51 }
 0x166   :  { %2226 = vmatpush.bf16.msrb.mxu3 %v3671_v43 }
 0x168   :  { %v1626_v48 = vpop.f32.mrf.mxu2  ;;  %v1640_v50 = vpop.f32.mrf.mxu3 }
 0x169   :  { %v1627_v49 = vadd.f32 %v1626_v48, %v1613_v47  ;;  %v3643_v47 = vor.u32 %v4092_v45, %v3642_v44  ;;  %v3644_v48 = vld [vmem:[#allocation9 + $0x70] sm:$0xf0] }
 0x16a   :  { %2227 = vmatpush.bf16.msrb.mxu3 %v3655_v60 }
 0x16b   :  { %v4427_v52 = vadd.f32 %v1640_v50, %v1627_v49  ;;  %v3650_v49 = vld [vmem:[#allocation9 + $0x68] sm:$0xf]  ;;  %v4093_v50 = vld [vmem:[#allocation9 + $0x74] sm:$0xf0]  ;;  %2185 = vmatpush.bf16.msrb.mxu0 %v3643_v47 }
 0x16c   :  { %v3651_v54 = vor.u32 %v4093_v50, %v3650_v49 }
 0x16d   :  { %v1673_v53 = vpack.c.bf16 %v4427_v52, %v4425_v51 }
 0x16e   :  { %2213 = vmatpush.bf16.msrb.mxu2 %v3651_v54  ;;  %2228 = vmatpush.bf16.msrb.mxu3 %v3639_v6 }
 0x16f   :  { %1980 = vmatmul.bf16.vlgmr.msra.gmra.mxu3 %v1673_v53  ;;  %v3647_v53 = vor.u32 %v4090_v46, %v3644_v48  ;;  %2186 = vmatpush.bf16.msrb.mxu0 %v3627_v58  ;;  %v2253_v58 = vmul.f32 0.8, %v4409_v29 }
 0x171   :  { %2199 = vmatpush.bf16.msrb.mxu1 %v3647_v53 }
 0x172   :  { %2214 = vmatpush.bf16.msrb.mxu2 %v3635_v3  ;;  %2229 = vmatpush.bf16.msrb.mxu3 %v3623_v16 }
 0x173   :  { %2187 = vmatpush.bf16.msrb.mxu0 %v3611_v35 }
 0x175   :  { %2200 = vmatpush.bf16.msrb.mxu1 %v3631_v2 }
 0x176   :  { %2215 = vmatpush.bf16.msrb.mxu2 %v3619_v13  ;;  %2230 = vmatpush.bf16.msrb.mxu3 %v3607_v33 }
 0x177   :  { %2188 = vmatpush.bf16.msrb.mxu0 %v3595_v20 }
 0x178   :  { %v1939_v36 = vpop.f32.mrf.mxu0 }
 0x179   :  { %2201 = vmatpush.bf16.msrb.mxu1 %v3615_v12  ;;  %v2257_v12 = vmul.f32 0.8, %v4407_v26 }
 0x17a   :  { %2216 = vmatpush.bf16.msrb.mxu2 %v3603_v30  ;;  %v2260_v30 = vmul.f32 0.8, %v4427_v52 }
 0x17d   :  { %2202 = vmatpush.bf16.msrb.mxu1 %v3599_v28  ;;  %v2259_v28 = vmul.f32 0.8, %v4421_v22 }
 0x180   :  { %v1941_v42 = vpop.f32.mrf.mxu0 }
 0x18d   :  { %v1953_v34 = vpop.f32.mrf.mxu1 }
 0x18e   :  { %v1954_v41 = vadd.f32 %v1953_v34, %v1939_v36 }
 0x195   :  { %v1955_v40 = vpop.f32.mrf.mxu1 }
 0x196   :  { %v1956_v44 = vadd.f32 %v1955_v40, %v1941_v42 }
 0x1ca   :  { %v1967_v37 = vpop.f32.mrf.mxu2 }
 0x1cb   :  { %v1968_v45 = vadd.f32 %v1967_v37, %v1954_v41 }
 0x1d2   :  { %v1969_v43 = vpop.f32.mrf.mxu2 }
 0x1d3   :  { %v1970_v46 = vadd.f32 %v1969_v43, %v1956_v44  ;;  %v4117_v43 = vld [vmem:[#allocation11 + $0x38] sm:$0xff] }
 0x1d4   :  { %v4125_v44 = vld [vmem:[#allocation11 + $0x78] sm:$0xff]  ;;  %2593 = vmatpush.bf16.msra.mxu0 %v4117_v43 }
 0x1d5   :  { %2607 = vmatpush.bf16.msra.mxu1 %v4125_v44 }
 0x1f2   :  { %v1981_v38 = vpop.f32.mrf.mxu3 }
 0x1f3   :  { %v1982_v47 = vadd.f32 %v1981_v38, %v1968_v45  ;;  %v4133_v45 = vld [vmem:[#allocation11 + $0xb8] sm:$0xff] }
 0x1f4   :  { %2621 = vmatpush.bf16.msra.mxu2 %v4133_v45 }
 0x1f5   :  { %v1986_v50 = vmax.f32 %v1982_v47, 0.0  ;;  %v4116_v47 = vld [vmem:[#allocation11 + $0x30] sm:$0xff] }
 0x1f6   :  { %2594 = vmatpush.bf16.msra.mxu0 %v4116_v47 }
 0x1fa   :  { %v1983_v48 = vpop.f32.mrf.mxu3 }
 0x1fb   :  { %v1984_v49 = vadd.f32 %v1983_v48, %v1970_v46  ;;  %v4141_v46 = vld [vmem:[#allocation11 + $0xf8] sm:$0xff]  ;;  %v4124_v48 = vld [vmem:[#allocation11 + $0x70] sm:$0xff] }
 0x1fc   :  { %2635 = vmatpush.bf16.msra.mxu3 %v4141_v46  ;;  %2608 = vmatpush.bf16.msra.mxu1 %v4124_v48 }
 0x1fd   :  { %v1987_v53 = vmax.f32 %v1984_v49, 0.0  ;;  %v4132_v49 = vld [vmem:[#allocation11 + $0xb0] sm:$0xff] }
 0x1fe   :  { %2622 = vmatpush.bf16.msra.mxu2 %v4132_v49 }
 0x1ff   :  { %v1988_v54 = vpack.c.bf16 %v1987_v53, %v1986_v50  ;;  %v4140_v50 = vld [vmem:[#allocation11 + $0xf0] sm:$0xff]  ;;  %v4115_v53 = vld [vmem:[#allocation11 + $0x28] sm:$0xff] }
 0x200   :  { %2636 = vmatpush.bf16.msra.mxu3 %v4140_v50  ;;  %2595 = vmatpush.bf16.msra.mxu0 %v4115_v53 }
 0x201   :  { %2189 = vmatmul.bf16.vlgmr.msrb.gmra.mxu0 %v1988_v54  ;;  %2203 = vmatmul.bf16.vlgmr.msrb.gmra.mxu1 %v1988_v54 }
 0x202   :  { %2217 = vmatmul.bf16.vlgmr.msrb.gmra.mxu2 %v1988_v54  ;;  %2231 = vmatmul.bf16.vlgmr.msrb.gmra.mxu3 %v1988_v54  ;;  %v4123_v54 = vld [vmem:[#allocation11 + $0x68] sm:$0xff] }
 0x203   :  { %2609 = vmatpush.bf16.msra.mxu1 %v4123_v54 }
 0x27e   :  { %v2190_v57 = vpop.f32.mrf.mxu0  ;;  %v2204_v59 = vpop.f32.mrf.mxu1 }
 0x27f   :  { %v2237_v60 = vmax.f32 %v2190_v57, 0.0  ;;  %v2238_v61 = vmax.f32 %v2204_v59, 0.0  ;;  %v4131_v57 = vld [vmem:[#allocation11 + $0xa8] sm:$0xff] }
 0x280   :  { %v4139_v59 = vld [vmem:[#allocation11 + $0xe8] sm:$0xff]  ;;  %2623 = vmatpush.bf16.msra.mxu2 %v4131_v57 }
 0x281   :  { %v2245_v62 = vmul.f32 0.2, %v2237_v60  ;;  %v2246_v63 = vmul.f32 0.2, %v2238_v61  ;;  %2637 = vmatpush.bf16.msra.mxu3 %v4139_v59  ;;  %v4114_v60 = vld [vmem:[#allocation11 + $0x20] sm:$0xff] }
 0x282   :  { %v4122_v61 = vld [vmem:[#allocation11 + $0x60] sm:$0xff]  ;;  %2596 = vmatpush.bf16.msra.mxu0 %v4114_v60 }
 0x283   :  { %v4433_v5 = vadd.f32 %v2253_v58, %v2245_v62  ;;  %v4435_v1 = vadd.f32 %v2254_v0, %v2246_v63  ;;  %v4130_v62 = vld [vmem:[#allocation11 + $0xa0] sm:$0xff]  ;;  %2610 = vmatpush.bf16.msra.mxu1 %v4122_v61  ;;  %v4113_v58 = vld [vmem:[#allocation11 + $0x18] sm:$0xff] }
 0x284   :  { %v4138_v63 = vld [vmem:[#allocation11 + $0xe0] sm:$0xff]  ;;  %2624 = vmatpush.bf16.msra.mxu2 %v4130_v62  ;;  %v4121_v0 = vld [vmem:[#allocation11 + $0x58] sm:$0xff] }
 0x285   :  { %v2218_v2 = vpop.f32.mrf.mxu2  ;;  %v2232_v3 = vpop.f32.mrf.mxu3  ;;  %v2285_v29 = vmul.f32 %v4433_v5, %v4433_v5  ;;  %v2286_v55 = vmul.f32 %v4435_v1, %v4435_v1  ;;  %2638 = vmatpush.bf16.msra.mxu3 %v4138_v63 }
 0x286   :  { %v2239_v4 = vmax.f32 %v2218_v2, 0.0  ;;  %v2240_v11 = vmax.f32 %v2232_v3, 0.0  ;;  %v2192_v6 = vpop.f32.mrf.mxu0  ;;  %v2206_v7 = vpop.f32.mrf.mxu1  ;;  %v4129_v2 = vld [vmem:[#allocation11 + $0x98] sm:$0xff]  ;;  %2597 = vmatpush.bf16.msra.mxu0 %v4113_v58 }
 0x287   :  { %v2241_v35 = vmax.f32 %v2192_v6, 0.0  ;;  %v2242_v9 = vmax.f32 %v2206_v7, 0.0  ;;  %v2293_v19 = vadd.f32 %v2286_v55, %v2285_v29  ;;  %v4137_v3 = vld [vmem:[#allocation11 + $0xd8] sm:$0xff]  ;;  %2611 = vmatpush.bf16.msra.mxu1 %v4121_v0  ;;  %v4128_v6 = vld [vmem:[#allocation11 + $0x90] sm:$0xff]  ;;  %v4110_v29 = vld [vmem:[#allocation11] sm:$0xff] }
 0x288   :  { %v2247_v10 = vmul.f32 0.2, %v2239_v4  ;;  %v2248_v39 = vmul.f32 0.2, %v2240_v11  ;;  %2625 = vmatpush.bf16.msra.mxu2 %v4129_v2  ;;  %v4112_v4 = vld [vmem:[#allocation11 + $0x10] sm:$0xff]  ;;  %v4118_v55 = vld [vmem:[#allocation11 + $0x40] sm:$0xff] }
 0x289   :  { %v2249_v13 = vmul.f32 0.2, %v2241_v35  ;;  %v2250_v14 = vmul.f32 0.2, %v2242_v9  ;;  %2639 = vmatpush.bf16.msra.mxu3 %v4137_v3  ;;  %v4120_v11 = vld [vmem:[#allocation11 + $0x50] sm:$0xff]  ;;  %v4127_v35 = vld [vmem:[#allocation11 + $0x88] sm:$0xff] }
 0x28a   :  { %v4445_v16 = vadd.f32 %v2255_v23, %v2247_v10  ;;  %v4447_v21 = vadd.f32 %v2256_v8, %v2248_v39  ;;  %v4136_v7 = vld [vmem:[#allocation11 + $0xd0] sm:$0xff]  ;;  %2598 = vmatpush.bf16.msra.mxu0 %v4112_v4  ;;  %v4111_v23 = vld [vmem:[#allocation11 + $0x8] sm:$0xff]  ;;  %v4126_v10 = vld [vmem:[#allocation11 + $0x80] sm:$0xff] }
 0x28b   :  { %v4449_v51 = vadd.f32 %v2257_v12, %v2249_v13  ;;  %v4451_v17 = vadd.f32 %v2258_v15, %v2250_v14  ;;  %2612 = vmatpush.bf16.msra.mxu1 %v4120_v11  ;;  %v4119_v8 = vld [vmem:[#allocation11 + $0x48] sm:$0xff]  ;;  %v4134_v39 = vld [vmem:[#allocation11 + $0xc0] sm:$0xff] }
 0x28c   :  { %v2287_v18 = vmul.f32 %v4445_v16, %v4445_v16  ;;  %v2288_v27 = vmul.f32 %v4447_v21, %v4447_v21  ;;  %2626 = vmatpush.bf16.msra.mxu2 %v4128_v6  ;;  %v4135_v9 = vld [vmem:[#allocation11 + $0xc8] sm:$0xff] }
 0x28d   :  { %v2220_v20 = vpop.f32.mrf.mxu2  ;;  %v2234_v24 = vpop.f32.mrf.mxu3  ;;  %v2289_v31 = vmul.f32 %v4449_v51, %v4449_v51  ;;  %v2290_v32 = vmul.f32 %v4451_v17, %v4451_v17  ;;  %2640 = vmatpush.bf16.msra.mxu3 %v4136_v7 }
 0x28e   :  { %v2243_v25 = vmax.f32 %v2220_v20, 0.0  ;;  %v2244_v26 = vmax.f32 %v2234_v24, 0.0  ;;  %v2294_v56 = vadd.f32 %v2293_v19, %v2287_v18  ;;  %2599 = vmatpush.bf16.msra.mxu0 %v4111_v23 }
 0x28f   :  { %v2298_v22 = vadd.f32 %v2290_v32, %v2289_v31  ;;  %2613 = vmatpush.bf16.msra.mxu1 %v4119_v8 }
 0x290   :  { %v2251_v33 = vmul.f32 0.2, %v2243_v25  ;;  %v2252_v34 = vmul.f32 0.2, %v2244_v26  ;;  %v2295_v36 = vadd.f32 %v2294_v56, %v2288_v27  ;;  %2627 = vmatpush.bf16.msra.mxu2 %v4127_v35 }
 0x291   :  { %2641 = vmatpush.bf16.msra.mxu3 %v4135_v9 }
 0x292   :  { %v4463_v37 = vadd.f32 %v2259_v28, %v2251_v33  ;;  %v4465_v38 = vadd.f32 %v2260_v30, %v2252_v34  ;;  %2296 = vadd.xlane.f32.xlu0 %v2295_v36  ;;  %2600 = vmatpush.bf16.msra.mxu0 %v4110_v29 }
 0x293   :  { %2614 = vmatpush.bf16.msra.mxu1 %v4118_v55 }
 0x294   :  { %v2291_v40 = vmul.f32 %v4463_v37, %v4463_v37  ;;  %v2292_v52 = vmul.f32 %v4465_v38, %v4465_v38  ;;  %2628 = vmatpush.bf16.msra.mxu2 %v4126_v10 }
 0x295   :  { %2642 = vmatpush.bf16.msra.mxu3 %v4134_v39 }
 0x296   :  { %v2299_v41 = vadd.f32 %v2298_v22, %v2291_v40 }
 0x298   :  { %v2300_v42 = vadd.f32 %v2299_v41, %v2292_v52 }
 0x29a   :  { %2301 = vadd.xlane.f32.xlu0 %v2300_v42 }
 0x305   :  { %v2297_v12 = vpop.xlane.xlu0 %2296 }
 0x306   :  { %v2303_v13 = vmax.f32 %v2297_v12, 1e-30 }
 0x308   :  { %4156 = vrsqrt.f32 %v2303_v13  ;;  %vm2311_vm1 = vweird.f32 %v2303_v13 }
 0x30d   :  { %v2302_v14 = vpop.xlane.xlu0 %2301 }
 0x30e   :  { %v4157_v15 = vpop.eup %4156  ;;  %v2304_v18 = vmax.f32 %v2302_v14, 1e-30 }
 0x30f   :  { %v2306_v19 = vmul.f32 %v4157_v15, %v2303_v13  ;;  %vm2312_vm0 = vweird.f32 %v4157_v15 }
 0x310   :  { %4158 = vrsqrt.f32 %v2304_v18  ;;  %vm2313_vm2 = vmor %vm2311_vm1, %vm2312_vm0  ;;  %vm2321_vm4 = vweird.f32 %v2304_v18 }
 0x311   :  { %v2307_v20 = vmul.f32 %v4157_v15, %v2306_v19 }
 0x313   :  { %v2308_v24 = vmul.f32 0.5, %v2307_v20 }
 0x315   :  { %v2309_v25 = vsub.f32 1.5, %v2308_v24 }
 0x316   :  { %v4159_v26 = vpop.eup %4158 }
 0x317   :  { %v2316_v27 = vmul.f32 %v4159_v26, %v2304_v18  ;;  %v2310_v56 = vmul.f32 %v4157_v15, %v2309_v25  ;;  %vm2322_vm3 = vweird.f32 %v4159_v26 }
 0x318   :  { %vm2323_vm5 = vmor %vm2321_vm4, %vm2322_vm3 }
 0x319   :  { %v2317_v28 = vmul.f32 %v4159_v26, %v2316_v27  ;;  %v2314_v31 = vsel %vm2313_vm2, %v4157_v15, %v2310_v56 }
 0x31a   :  { %v2325_v34 = vmul.f32 %v2314_v31, %v4433_v5  ;;  %v2326_v40 = vmul.f32 %v2314_v31, %v4435_v1  ;;  %v2327_v22 = vmul.f32 %v2314_v31, %v4445_v16  ;;  %v2328_v52 = vmul.f32 %v2314_v31, %v4447_v21 }
 0x31b   :  { %v2318_v30 = vmul.f32 0.5, %v2317_v28 }
 0x31d   :  { %v2319_v32 = vsub.f32 1.5, %v2318_v30 }
 0x31f   :  { %v2320_v33 = vmul.f32 %v4159_v26, %v2319_v32 }
 0x321   :  { %v2324_v36 = vsel %vm2323_vm5, %v4159_v26, %v2320_v33 }
 0x322   :  { %v2329_v41 = vmul.f32 %v2324_v36, %v4449_v51  ;;  %v2330_v42 = vmul.f32 %v2324_v36, %v4451_v17  ;;  %v2331_v43 = vmul.f32 %v2324_v36, %v4463_v37  ;;  %v2332_v44 = vmul.f32 %v2324_v36, %v4465_v38 }
 0x324   :  { %v2333_v45 = vpack.c.bf16 %v2329_v41, %v2325_v34  ;;  %v2334_v46 = vpack.c.bf16 %v2330_v42, %v2326_v40  ;;  %v2335_v47 = vpack.c.bf16 %v2331_v43, %v2327_v22  ;;  %v2336_v48 = vpack.c.bf16 %v2332_v44, %v2328_v52 }
 0x326   :  { %2601 = vmatmul.bf16.vlgmr.msra.gmra.mxu0 %v2333_v45  ;;  %2615 = vmatmul.bf16.vlgmr.msra.gmra.mxu1 %v2334_v46 }
 0x327   :  { %2629 = vmatmul.bf16.vlgmr.msra.gmra.mxu2 %v2335_v47  ;;  %2643 = vmatmul.bf16.vlgmr.msra.gmra.mxu3 %v2336_v48 }
 0x3a3   :  { %v2602_v5 = vpop.f32.mrf.mxu0  ;;  %v2616_v1 = vpop.f32.mrf.mxu1 }
 0x3a4   :  { %v2617_v16 = vadd.f32 %v2616_v1, %v2602_v5 }
 0x3aa   :  { %v2630_v21 = vpop.f32.mrf.mxu2  ;;  %v2644_v49 = vpop.f32.mrf.mxu3 }
 0x3ab   :  { %v2631_v51 = vadd.f32 %v2630_v21, %v2617_v16  ;;  %v2604_v17 = vpop.f32.mrf.mxu0  ;;  %v2618_v53 = vpop.f32.mrf.mxu1 }
 0x3ac   :  { %v2619_v37 = vadd.f32 %v2618_v53, %v2604_v17 }
 0x3ad   :  { %v2645_v50 = vadd.f32 %v2644_v49, %v2631_v51 }
 0x3af   :  { %2649 = vst [vmem:[#allocation12] sm:$0xff] %v2645_v50 }
 0x3b2   :  { %v2632_v38 = vpop.f32.mrf.mxu2  ;;  %v2646_v57 = vpop.f32.mrf.mxu3 }
 0x3b3   :  { %v2633_v54 = vadd.f32 %v2632_v38, %v2619_v37 }
 0x3b5   :  { %v2647_v59 = vadd.f32 %v2646_v57, %v2633_v54 }
 0x3b7   :  { %2650 = vst [vmem:[#allocation12 + $0x8] sm:$0xff] %v2647_v59 }
 0x3b8   :  { %2663 = dma.vmem_to_hbm [thread:$0]  %s2656_s4, 256, %s2658_s23, [#allocation5], %s4324_s24, %s4324_s24, %s4325_s25  }
 0x3b9   :  { %4310 = dma.done.wait [#allocation5], 256  }
 0x3ba   :  { %4311 = vsyncadd [#allocation5], 4294967040 }
 0x3bb   :  { %2668 = vsyncpa [#allocation4], 1 }
 0x3bc   :  { %2669 = vsyncpa [#allocation7], 1 }
 0x3bd   :  { %2670 = vsyncpa [#allocation10], 1 }
 0x3be   :  { %2671 = vsyncpa [#allocation5], 1 }

</bundles_post_ra>
